<compile_context>
chip_gen: v7x
topology: tpu7x:2x2x1
jax: 0.10.0
libtpu: 0.0.40
codegen_flags: <defaults>
</compile_context>

<pallas_src>
import jax
import jax.numpy as jnp
from jax.experimental import pallas as pl
from jax.experimental.pallas import tpu as pltpu

EPS = 1e-5
F32 = jnp.float32
BF16 = jnp.bfloat16
FEAT_IN = 8    # point channel dim 3, zero-padded to the f32 sublane granule
FEAT_H = 16    # e3nn hidden dim 10, zero-padded


def _pad_to(a, shape):
    return jnp.pad(a, [(0, t - s) for s, t in zip(a.shape, shape)])


# --------------------- per-point MLP + max-pool kernel ----------------------
# max over points of:  relu(relu(relu(x @ fw1) @ w1 + b1) @ w2 + b2) @ w3
# (the bias + ReLU of the w3 layer are hoisted past the max, applied in XLA).

def _point_mlp_pool_kernel(x_ref, fw1_ref, w1_ref, b1_ref, w2_ref, b2_ref,
                           w3_ref, o_ref):
    c = pl.program_id(1)                                      # point-chunk id
    x = x_ref[0]                                              # (TN, 8) f32
    # e3nn layer 1 (1/sqrt(3) folded into fw1); tiny aligned f32 MXU matmul.
    h = jnp.maximum(jnp.dot(x, fw1_ref[...], preferred_element_type=F32), 0.0)
    # conv1 with e3nn layer 2 (and, for the encoder branch, the learned 3x3
    # point transform) pre-folded into w1 -> xf / y never materialized.
    a = jnp.maximum(jnp.dot(h, w1_ref[0], preferred_element_type=F32)
                    + b1_ref[...], 0.0)                       # (TN, 64)
    a = jnp.maximum(jnp.dot(a.astype(BF16), w2_ref[...],
                            preferred_element_type=F32) + b2_ref[...], 0.0)
    a = jnp.dot(a.astype(BF16), w3_ref[...],
                preferred_element_type=F32)                   # (TN, cout)
    m = jnp.max(a, axis=0, keepdims=True)                     # (1, cout)

    @pl.when(c == 0)
    def _():
        o_ref[0] = jnp.full(o_ref.shape[1:], -jnp.inf, o_ref.dtype)

    o_ref[0] = jnp.maximum(o_ref[0], m)                       # running max


def _pointnet_pool(x, fw1, w1, b1, w2, b2, w3, *, tn):
    """x: (B, N, FEAT_IN) f32; w1: (1|B, FEAT_H, 64); returns (B, cout) f32."""
    B, N, _ = x.shape
    assert N % tn == 0 and tn % 8 == 0
    nc = N // tn
    cout = w3.shape[-1]
    w1_map = ((lambda b, c: (b, 0, 0)) if w1.shape[0] == B
              else (lambda b, c: (0, 0, 0)))

    flops = 2 * B * N * (fw1.size + w1.shape[-2] * w1.shape[-1]
                         + w2.size + w3.size)
    bytes_accessed = (x.size * x.dtype.itemsize + B * cout * 4
                      + sum(a.size * a.dtype.itemsize
                            for a in (fw1, w1, b1, w2, b2, w3)))

    out = pl.pallas_call(
        _point_mlp_pool_kernel,
        out_shape=jax.ShapeDtypeStruct((B, 1, cout), F32),
        grid=(B, nc),
        in_specs=[
            pl.BlockSpec((1, tn, FEAT_IN), lambda b, c: (b, c, 0)),
            pl.BlockSpec(fw1.shape, lambda b, c: (0, 0)),
            pl.BlockSpec((1,) + w1.shape[1:], w1_map),
            pl.BlockSpec(b1.shape, lambda b, c: (0, 0)),
            pl.BlockSpec(w2.shape, lambda b, c: (0, 0)),
            pl.BlockSpec(b2.shape, lambda b, c: (0, 0)),
            pl.BlockSpec(w3.shape, lambda b, c: (0, 0)),
        ],
        out_specs=pl.BlockSpec((1, 1, cout), lambda b, c: (b, 0, 0)),
        compiler_params=pltpu.CompilerParams(
            dimension_semantics=("parallel", "arbitrary")),
        cost_estimate=pl.CostEstimate(flops=flops, transcendentals=0,
                                      bytes_accessed=bytes_accessed),
    )(x, fw1, w1, b1, w2, b2, w3)
    return out[:, 0, :]


# --------------------------- params & weight prep ---------------------------

def make_params(key, num_classes=10):
    keys = iter(jax.random.split(key, 64))

    def lin(cin, cout):
        bound = (1.0 / cin) ** 0.5
        W = jax.random.uniform(next(keys), (cin, cout), F32, -bound, bound)
        b = jax.random.uniform(next(keys), (cout,), F32, -bound, bound)
        return W, b

    def bn(c):
        return dict(gamma=jax.random.uniform(next(keys), (c,), F32, 0.5, 1.5),
                    beta=0.1 * jax.random.normal(next(keys), (c,), F32),
                    mean=0.1 * jax.random.normal(next(keys), (c,), F32),
                    var=jax.random.uniform(next(keys), (c,), F32, 0.5, 1.5))

    p = {}
    # e3nn FullyConnectedNet([3, 10, 3]) — weights ~ N(0, 1), no bias.
    p['feat_w1'] = jax.random.normal(next(keys), (3, 10), F32)
    p['feat_w2'] = jax.random.normal(next(keys), (10, 3), F32)
    p['stn'] = dict(
        conv1=lin(3, 64), bn1=bn(64),
        conv2=lin(64, 128), bn2=bn(128),
        conv3=lin(128, 1024), bn3=bn(1024),
        fc1=lin(1024, 512), bn4=bn(512),
        fc2=lin(512, 256), bn5=bn(256),
        fc3=lin(256, 9),
    )
    p['enc'] = dict(
        conv1=lin(3, 64), bn1=bn(64),
        conv2=lin(64, 128), bn2=bn(128),
        conv3=lin(128, 512), bn3=bn(512),
    )
    p['head'] = dict(
        fc1=lin(512, 256), bn=bn(256),
        fc2=lin(256, num_classes),
    )
    return p


def fold_bn(wb, bnp):
    """Fold inference-mode BatchNorm1d into the preceding linear layer."""
    W, b = wb
    s = bnp['gamma'] / jnp.sqrt(bnp['var'] + EPS)
    return W * s[None, :], ((b - bnp['mean']) * s + bnp['beta'])[None, :]


def prepare_weights(p):
    # e3nn scale constants: layer1 / sqrt(fan_in=3); normalize2mom(relu) taken
    # as the analytic sqrt(2); layer2 / sqrt(10) — folded into fw1 / fw2.
    # TODO(synk): e3nn estimates the normalize2mom constant numerically.
    fw1 = _pad_to(p['feat_w1'] * (1.0 / 3.0 ** 0.5), (FEAT_IN, FEAT_H))
    fw2 = p['feat_w2'] * (2.0 ** 0.5 / 10.0 ** 0.5)          # (10, 3)

    s = p['stn']
    sw1, sb1 = fold_bn(s['conv1'], s['bn1'])
    sw2, sb2 = fold_bn(s['conv2'], s['bn2'])
    sw3, sb3 = fold_bn(s['conv3'], s['bn3'])
    tw1, tb1 = fold_bn(s['fc1'], s['bn4'])
    tw2, tb2 = fold_bn(s['fc2'], s['bn5'])
    tw3 = s['fc3'][0]
    iden = jnp.array([1, 0, 0, 0, 1, 0, 0, 0, 1], F32)[None, :]
    tb3 = s['fc3'][1][None, :] + iden                        # identity pre-folded

    e = p['enc']
    ew1, eb1 = fold_bn(e['conv1'], e['bn1'])
    ew2, eb2 = fold_bn(e['conv2'], e['bn2'])
    ew3, eb3 = fold_bn(e['conv3'], e['bn3'])

    h = p['head']
    hw1, hb1 = fold_bn(h['fc1'], h['bn'])
    hw2, hb2 = h['fc2'][0], h['fc2'][1][None, :]

    # Fold e3nn layer 2 into STN conv1 so xf is never materialized.
    sw1p = _pad_to(fw2 @ sw1, (FEAT_H, 64))[None]            # (1, 16, 64) f32

    bf = lambda a: a.astype(BF16)
    return dict(
        fw1=fw1, fw2=fw2, ew1=ew1,
        # STN point branch (Pallas)
        sw1p=sw1p, sb1=sb1, sw2=bf(sw2), sb2=sb2, sw3=bf(sw3), sb3=sb3,
        # STN FC head (XLA, batched over B)
        tw1=tw1, tb1=tb1, tw2=tw2, tb2=tb2, tw3=tw3, tb3=tb3,
        # encoder point branch (Pallas)
        eb1=eb1, ew2=bf(ew2), eb2=eb2, ew3=bf(ew3), eb3=eb3,
        # classifier head (XLA, batched over B)
        hw1=hw1, hb1=hb1, hw2=hw2, hb2=hb2,
    )


# -------------------------------- forward -----------------------------------

def so3_forward(p, x, num_classes, tn=512):
    B, N, C = x.shape
    assert C == 3
    tn = min(tn, N)
    assert N % tn == 0 and tn % 8 == 0
    w = prepare_weights(p)
    xp = jnp.pad(x, ((0, 0), (0, 0), (0, FEAT_IN - C)))       # lane-aligned DMA

    # --- Stage 1 (Pallas): STN per-point MLP + max over points -> (B, 1024).
    stn_pool = _pointnet_pool(xp, w['fw1'], w['sw1p'], w['sb1'],
                              w['sw2'], w['sb2'], w['sw3'], tn=tn)
    g = jnp.maximum(stn_pool + w['sb3'], 0.0)                 # hoisted bias+relu

    # --- Stage 2 (XLA, batched M=B): STN FC head -> 3x3 transform.
    g = jnp.maximum(g @ w['tw1'] + w['tb1'], 0.0)
    g = jnp.maximum(g @ w['tw2'] + w['tb2'], 0.0)
    trans = (g @ w['tw3'] + w['tb3']).reshape(B, 3, 3)

    # Fold e3nn layer 2 + learned transform + encoder conv1 -> one weight.
    ew1_eff = jnp.einsum('ij,bjk,kl->bil', w['fw2'], trans, w['ew1'])
    ew1_eff = _pad_to(ew1_eff, (B, FEAT_H, 64))               # (B, 16, 64) f32

    # --- Stage 3 (Pallas): encoder per-point MLP + max over points -> (B, 512).
    enc_pool = _pointnet_pool(xp, w['fw1'], ew1_eff, w['eb1'],
                              w['ew2'], w['eb2'], w['ew3'], tn=tn)
    glob = enc_pool + w['eb3']                                # bn3: bias, no relu

    # --- Stage 4 (XLA, batched M=B): classifier head.
    # TODO(synk): Dropout(p=0.4) treated as inference-mode identity.
    h = jnp.maximum(glob @ w['hw1'] + w['hb1'], 0.0)
    return h @ w['hw2'] + w['hb2']


if __name__ == "__main__":
    key = jax.random.PRNGKey(0)
    pkey, xkey = jax.random.split(key)
    num_classes = 10
    params = make_params(pkey, num_classes=num_classes)

    B, N = 2, 128                                   # (batch, points), channel=3
    x = jax.random.normal(xkey, (B, N, 3), F32)     # channels-last point cloud

    fwd = jax.jit(lambda xx: so3_forward(params, xx, num_classes))
    logits = fwd(x)
    jax.block_until_ready(logits)
    assert logits.shape == (B, num_classes)
    assert bool(jnp.all(jnp.isfinite(logits)))
    print("KERNEL_OK")
</pallas_src>

<mosaic_0001>
module attributes {stable_mosaic.version = 11 : i64} {
  func.func @_point_mlp_pool_kernel(%arg0: i32, %arg1: i32, %arg2: memref<1x128x8xf32, #tpu.memory_space<vmem>>, %arg3: memref<8x16xf32, #tpu.memory_space<vmem>>, %arg4: memref<1x16x64xf32, #tpu.memory_space<vmem>>, %arg5: memref<1x64xf32, #tpu.memory_space<vmem>>, %arg6: memref<64x128xbf16, #tpu.memory_space<vmem>>, %arg7: memref<1x128xf32, #tpu.memory_space<vmem>>, %arg8: memref<128x1024xbf16, #tpu.memory_space<vmem>>, %arg9: memref<1x1x1024xf32, #tpu.memory_space<vmem>>) attributes {dimension_semantics = [#tpu.dimension_semantics<parallel>, #tpu.dimension_semantics<arbitrary>], iteration_bounds = array<i64: 2, 1>, scalar_prefetch = 0 : i64, scratch_operands = 0 : i64, tpu.core_type = #tpu.core_type<tc>, window_params = [{transform_indices = @transform_0, window_bounds = array<i64: 1, 128, 8>}, {pipeline_mode = #tpu.pipeline_mode<synchronous>, transform_indices = @transform_1, window_bounds = array<i64: 8, 16>}, {pipeline_mode = #tpu.pipeline_mode<synchronous>, transform_indices = @transform_2, window_bounds = array<i64: 1, 16, 64>}, {pipeline_mode = #tpu.pipeline_mode<synchronous>, transform_indices = @transform_3, window_bounds = array<i64: 1, 64>}, {pipeline_mode = #tpu.pipeline_mode<synchronous>, transform_indices = @transform_4, window_bounds = array<i64: 64, 128>}, {pipeline_mode = #tpu.pipeline_mode<synchronous>, transform_indices = @transform_5, window_bounds = array<i64: 1, 128>}, {pipeline_mode = #tpu.pipeline_mode<synchronous>, transform_indices = @transform_6, window_bounds = array<i64: 128, 1024>}, {transform_indices = @transform_7, window_bounds = array<i64: 1, 1, 1024>}]} {
    %c0 = arith.constant 0 : index
    %c0_0 = arith.constant 0 : index
    %c0_1 = arith.constant 0 : index
    %0 = vector.load %arg2[%c0, %c0_0, %c0_1] : memref<1x128x8xf32, #tpu.memory_space<vmem>>, vector<1x128x8xf32>
    %1 = vector.shape_cast %0 : vector<1x128x8xf32> to vector<128x8xf32>
    %c0_2 = arith.constant 0 : index
    %c0_3 = arith.constant 0 : index
    %2 = vector.load %arg3[%c0_2, %c0_3] : memref<8x16xf32, #tpu.memory_space<vmem>>, vector<8x16xf32>
    %cst = arith.constant dense<0.000000e+00> : vector<128x16xf32>
    %3 = tpu.matmul %1, %2, %cst {dimension_numbers = #tpu.dot_dimension_numbers<[1], [0], [0], [1], [0, 0, 1, 1], [], []>} : vector<128x8xf32>, vector<8x16xf32>, vector<128x16xf32> -> vector<128x16xf32>
    %cst_4 = arith.constant 0.000000e+00 : f32
    %4 = vector.broadcast %cst_4 : f32 to vector<128x16xf32>
    %5 = arith.maximumf %3, %4 : vector<128x16xf32>
    %c0_5 = arith.constant 0 : index
    %c0_6 = arith.constant 0 : index
    %c0_7 = arith.constant 0 : index
    %6 = vector.load %arg4[%c0_5, %c0_6, %c0_7] : memref<1x16x64xf32, #tpu.memory_space<vmem>>, vector<1x16x64xf32>
    %7 = vector.shape_cast %6 : vector<1x16x64xf32> to vector<16x64xf32>
    %cst_8 = arith.constant dense<0.000000e+00> : vector<128x64xf32>
    %8 = tpu.matmul %5, %7, %cst_8 {dimension_numbers = #tpu.dot_dimension_numbers<[1], [0], [0], [1], [0, 0, 1, 1], [], []>} : vector<128x16xf32>, vector<16x64xf32>, vector<128x64xf32> -> vector<128x64xf32>
    %c0_9 = arith.constant 0 : index
    %c0_10 = arith.constant 0 : index
    %9 = vector.load %arg5[%c0_9, %c0_10] : memref<1x64xf32, #tpu.memory_space<vmem>>, vector<1x64xf32>
    %10 = vector.broadcast %9 : vector<1x64xf32> to vector<128x64xf32>
    %11 = arith.addf %8, %10 : vector<128x64xf32>
    %cst_11 = arith.constant 0.000000e+00 : f32
    %12 = vector.broadcast %cst_11 : f32 to vector<128x64xf32>
    %13 = arith.maximumf %11, %12 : vector<128x64xf32>
    %14 = arith.truncf %13 : vector<128x64xf32> to vector<128x64xbf16>
    %c0_12 = arith.constant 0 : index
    %c0_13 = arith.constant 0 : index
    %15 = vector.load %arg6[%c0_12, %c0_13] : memref<64x128xbf16, #tpu.memory_space<vmem>>, vector<64x128xbf16>
    %cst_14 = arith.constant dense<0.000000e+00> : vector<128x128xf32>
    %16 = tpu.matmul %14, %15, %cst_14 {dimension_numbers = #tpu.dot_dimension_numbers<[1], [0], [0], [1], [0, 0, 1, 1], [], []>} : vector<128x64xbf16>, vector<64x128xbf16>, vector<128x128xf32> -> vector<128x128xf32>
    %c0_15 = arith.constant 0 : index
    %c0_16 = arith.constant 0 : index
    %17 = vector.load %arg7[%c0_15, %c0_16] : memref<1x128xf32, #tpu.memory_space<vmem>>, vector<1x128xf32>
    %18 = vector.broadcast %17 : vector<1x128xf32> to vector<128x128xf32>
    %19 = arith.addf %16, %18 : vector<128x128xf32>
    %cst_17 = arith.constant 0.000000e+00 : f32
    %20 = vector.broadcast %cst_17 : f32 to vector<128x128xf32>
    %21 = arith.maximumf %19, %20 : vector<128x128xf32>
    %22 = arith.truncf %21 : vector<128x128xf32> to vector<128x128xbf16>
    %c0_18 = arith.constant 0 : index
    %c0_19 = arith.constant 0 : index
    %23 = vector.load %arg8[%c0_18, %c0_19] : memref<128x1024xbf16, #tpu.memory_space<vmem>>, vector<128x1024xbf16>
    %cst_20 = arith.constant dense<0.000000e+00> : vector<128x1024xf32>
    %24 = tpu.matmul %22, %23, %cst_20 {dimension_numbers = #tpu.dot_dimension_numbers<[1], [0], [0], [1], [0, 0, 1, 1], [], []>} : vector<128x128xbf16>, vector<128x1024xbf16>, vector<128x1024xf32> -> vector<128x1024xf32>
    %cst_21 = arith.constant dense<0xFF800000> : vector<1024xf32>
    %25 = vector.multi_reduction <maximumf>, %24, %cst_21 [0] : vector<128x1024xf32> to vector<1024xf32>
    %26 = vector.shape_cast %25 : vector<1024xf32> to vector<1x1024xf32>
    %c0_i32 = arith.constant 0 : i32
    %27 = arith.cmpi eq, %arg1, %c0_i32 : i32
    %28 = arith.extui %27 : i1 to i32
    %c0_i32_22 = arith.constant 0 : i32
    %29 = arith.cmpi ne, %28, %c0_i32_22 : i32
    scf.if %29 {
      %cst_29 = arith.constant 0xFF800000 : f32
      %36 = vector.broadcast %cst_29 : f32 to vector<1x1024xf32>
      %c0_30 = arith.constant 0 : index
      %c0_31 = arith.constant 0 : index
      %c0_32 = arith.constant 0 : index
      %37 = vector.load %arg9[%c0_30, %c0_31, %c0_32] : memref<1x1x1024xf32, #tpu.memory_space<vmem>>, vector<1x1x1024xf32>
      %38 = vector.shape_cast %37 : vector<1x1x1024xf32> to vector<1x1024xf32>
      %39 = vector.shape_cast %36 : vector<1x1024xf32> to vector<1x1x1024xf32>
      tpu.vector_store %arg9[%c0_30, %c0_31, %c0_32], %39 {strides = array<i32>} : memref<1x1x1024xf32, #tpu.memory_space<vmem>>, vector<1x1x1024xf32>,
    } else {
    }
    %c0_23 = arith.constant 0 : index
    %c0_24 = arith.constant 0 : index
    %c0_25 = arith.constant 0 : index
    %30 = vector.load %arg9[%c0_23, %c0_24, %c0_25] : memref<1x1x1024xf32, #tpu.memory_space<vmem>>, vector<1x1x1024xf32>
    %31 = vector.shape_cast %30 : vector<1x1x1024xf32> to vector<1x1024xf32>
    %32 = arith.maximumf %31, %26 : vector<1x1024xf32>
    %c0_26 = arith.constant 0 : index
    %c0_27 = arith.constant 0 : index
    %c0_28 = arith.constant 0 : index
    %33 = vector.load %arg9[%c0_26, %c0_27, %c0_28] : memref<1x1x1024xf32, #tpu.memory_space<vmem>>, vector<1x1x1024xf32>
    %34 = vector.shape_cast %33 : vector<1x1x1024xf32> to vector<1x1024xf32>
    %35 = vector.shape_cast %32 : vector<1x1024xf32> to vector<1x1x1024xf32>
    tpu.vector_store %arg9[%c0_26, %c0_27, %c0_28], %35 {strides = array<i32>} : memref<1x1x1024xf32, #tpu.memory_space<vmem>>, vector<1x1x1024xf32>,
    return
  }
  func.func @transform_0(%arg0: i32, %arg1: i32) -> (i32, i32, i32) {
    %c0_i32 = arith.constant 0 : i32
    %c0_i32_0 = arith.constant 0 : i32
    return %arg0, %arg1, %c0_i32 : i32, i32, i32
  }
  func.func @transform_1(%arg0: i32, %arg1: i32) -> (i32, i32) {
    %c0_i32 = arith.constant 0 : i32
    %c0_i32_0 = arith.constant 0 : i32
    %c0_i32_1 = arith.constant 0 : i32
    return %c0_i32, %c0_i32_0 : i32, i32
  }
  func.func @transform_2(%arg0: i32, %arg1: i32) -> (i32, i32, i32) {
    %c0_i32 = arith.constant 0 : i32
    %c0_i32_0 = arith.constant 0 : i32
    %c0_i32_1 = arith.constant 0 : i32
    %c0_i32_2 = arith.constant 0 : i32
    return %c0_i32, %c0_i32_0, %c0_i32_1 : i32, i32, i32
  }
  func.func @transform_3(%arg0: i32, %arg1: i32) -> (i32, i32) {
    %c0_i32 = arith.constant 0 : i32
    %c0_i32_0 = arith.constant 0 : i32
    %c0_i32_1 = arith.constant 0 : i32
    return %c0_i32, %c0_i32_0 : i32, i32
  }
  func.func @transform_4(%arg0: i32, %arg1: i32) -> (i32, i32) {
    %c0_i32 = arith.constant 0 : i32
    %c0_i32_0 = arith.constant 0 : i32
    %c0_i32_1 = arith.constant 0 : i32
    return %c0_i32, %c0_i32_0 : i32, i32
  }
  func.func @transform_5(%arg0: i32, %arg1: i32) -> (i32, i32) {
    %c0_i32 = arith.constant 0 : i32
    %c0_i32_0 = arith.constant 0 : i32
    %c0_i32_1 = arith.constant 0 : i32
    return %c0_i32, %c0_i32_0 : i32, i32
  }
  func.func @transform_6(%arg0: i32, %arg1: i32) -> (i32, i32) {
    %c0_i32 = arith.constant 0 : i32
    %c0_i32_0 = arith.constant 0 : i32
    %c0_i32_1 = arith.constant 0 : i32
    return %c0_i32, %c0_i32_0 : i32, i32
  }
  func.func @transform_7(%arg0: i32, %arg1: i32) -> (i32, i32, i32) {
    %c0_i32 = arith.constant 0 : i32
    %c0_i32_0 = arith.constant 0 : i32
    %c0_i32_1 = arith.constant 0 : i32
    return %arg0, %c0_i32, %c0_i32_0 : i32, i32, i32
  }
}

module attributes {stable_mosaic.version = 11 : i64} {
  func.func @_point_mlp_pool_kernel(%arg0: i32, %arg1: i32, %arg2: memref<1x128x8xf32, #tpu.memory_space<vmem>>, %arg3: memref<8x16xf32, #tpu.memory_space<vmem>>, %arg4: memref<1x16x64xf32, #tpu.memory_space<vmem>>, %arg5: memref<1x64xf32, #tpu.memory_space<vmem>>, %arg6: memref<64x128xbf16, #tpu.memory_space<vmem>>, %arg7: memref<1x128xf32, #tpu.memory_space<vmem>>, %arg8: memref<128x512xbf16, #tpu.memory_space<vmem>>, %arg9: memref<1x1x512xf32, #tpu.memory_space<vmem>>) attributes {dimension_semantics = [#tpu.dimension_semantics<parallel>, #tpu.dimension_semantics<arbitrary>], iteration_bounds = array<i64: 2, 1>, scalar_prefetch = 0 : i64, scratch_operands = 0 : i64, tpu.core_type = #tpu.core_type<tc>, window_params = [{transform_indices = @transform_0, window_bounds = array<i64: 1, 128, 8>}, {pipeline_mode = #tpu.pipeline_mode<synchronous>, transform_indices = @transform_1, window_bounds = array<i64: 8, 16>}, {transform_indices = @transform_2, window_bounds = array<i64: 1, 16, 64>}, {pipeline_mode = #tpu.pipeline_mode<synchronous>, transform_indices = @transform_3, window_bounds = array<i64: 1, 64>}, {pipeline_mode = #tpu.pipeline_mode<synchronous>, transform_indices = @transform_4, window_bounds = array<i64: 64, 128>}, {pipeline_mode = #tpu.pipeline_mode<synchronous>, transform_indices = @transform_5, window_bounds = array<i64: 1, 128>}, {pipeline_mode = #tpu.pipeline_mode<synchronous>, transform_indices = @transform_6, window_bounds = array<i64: 128, 512>}, {transform_indices = @transform_7, window_bounds = array<i64: 1, 1, 512>}]} {
    %c0 = arith.constant 0 : index
    %c0_0 = arith.constant 0 : index
    %c0_1 = arith.constant 0 : index
    %0 = vector.load %arg2[%c0, %c0_0, %c0_1] : memref<1x128x8xf32, #tpu.memory_space<vmem>>, vector<1x128x8xf32>
    %1 = vector.shape_cast %0 : vector<1x128x8xf32> to vector<128x8xf32>
    %c0_2 = arith.constant 0 : index
    %c0_3 = arith.constant 0 : index
    %2 = vector.load %arg3[%c0_2, %c0_3] : memref<8x16xf32, #tpu.memory_space<vmem>>, vector<8x16xf32>
    %cst = arith.constant dense<0.000000e+00> : vector<128x16xf32>
    %3 = tpu.matmul %1, %2, %cst {dimension_numbers = #tpu.dot_dimension_numbers<[1], [0], [0], [1], [0, 0, 1, 1], [], []>} : vector<128x8xf32>, vector<8x16xf32>, vector<128x16xf32> -> vector<128x16xf32>
    %cst_4 = arith.constant 0.000000e+00 : f32
    %4 = vector.broadcast %cst_4 : f32 to vector<128x16xf32>
    %5 = arith.maximumf %3, %4 : vector<128x16xf32>
    %c0_5 = arith.constant 0 : index
    %c0_6 = arith.constant 0 : index
    %c0_7 = arith.constant 0 : index
    %6 = vector.load %arg4[%c0_5, %c0_6, %c0_7] : memref<1x16x64xf32, #tpu.memory_space<vmem>>, vector<1x16x64xf32>
    %7 = vector.shape_cast %6 : vector<1x16x64xf32> to vector<16x64xf32>
    %cst_8 = arith.constant dense<0.000000e+00> : vector<128x64xf32>
    %8 = tpu.matmul %5, %7, %cst_8 {dimension_numbers = #tpu.dot_dimension_numbers<[1], [0], [0], [1], [0, 0, 1, 1], [], []>} : vector<128x16xf32>, vector<16x64xf32>, vector<128x64xf32> -> vector<128x64xf32>
    %c0_9 = arith.constant 0 : index
    %c0_10 = arith.constant 0 : index
    %9 = vector.load %arg5[%c0_9, %c0_10] : memref<1x64xf32, #tpu.memory_space<vmem>>, vector<1x64xf32>
    %10 = vector.broadcast %9 : vector<1x64xf32> to vector<128x64xf32>
    %11 = arith.addf %8, %10 : vector<128x64xf32>
    %cst_11 = arith.constant 0.000000e+00 : f32
    %12 = vector.broadcast %cst_11 : f32 to vector<128x64xf32>
    %13 = arith.maximumf %11, %12 : vector<128x64xf32>
    %14 = arith.truncf %13 : vector<128x64xf32> to vector<128x64xbf16>
    %c0_12 = arith.constant 0 : index
    %c0_13 = arith.constant 0 : index
    %15 = vector.load %arg6[%c0_12, %c0_13] : memref<64x128xbf16, #tpu.memory_space<vmem>>, vector<64x128xbf16>
    %cst_14 = arith.constant dense<0.000000e+00> : vector<128x128xf32>
    %16 = tpu.matmul %14, %15, %cst_14 {dimension_numbers = #tpu.dot_dimension_numbers<[1], [0], [0], [1], [0, 0, 1, 1], [], []>} : vector<128x64xbf16>, vector<64x128xbf16>, vector<128x128xf32> -> vector<128x128xf32>
    %c0_15 = arith.constant 0 : index
    %c0_16 = arith.constant 0 : index
    %17 = vector.load %arg7[%c0_15, %c0_16] : memref<1x128xf32, #tpu.memory_space<vmem>>, vector<1x128xf32>
    %18 = vector.broadcast %17 : vector<1x128xf32> to vector<128x128xf32>
    %19 = arith.addf %16, %18 : vector<128x128xf32>
    %cst_17 = arith.constant 0.000000e+00 : f32
    %20 = vector.broadcast %cst_17 : f32 to vector<128x128xf32>
    %21 = arith.maximumf %19, %20 : vector<128x128xf32>
    %22 = arith.truncf %21 : vector<128x128xf32> to vector<128x128xbf16>
    %c0_18 = arith.constant 0 : index
    %c0_19 = arith.constant 0 : index
    %23 = vector.load %arg8[%c0_18, %c0_19] : memref<128x512xbf16, #tpu.memory_space<vmem>>, vector<128x512xbf16>
    %cst_20 = arith.constant dense<0.000000e+00> : vector<128x512xf32>
    %24 = tpu.matmul %22, %23, %cst_20 {dimension_numbers = #tpu.dot_dimension_numbers<[1], [0], [0], [1], [0, 0, 1, 1], [], []>} : vector<128x128xbf16>, vector<128x512xbf16>, vector<128x512xf32> -> vector<128x512xf32>
    %cst_21 = arith.constant dense<0xFF800000> : vector<512xf32>
    %25 = vector.multi_reduction <maximumf>, %24, %cst_21 [0] : vector<128x512xf32> to vector<512xf32>
    %26 = vector.shape_cast %25 : vector<512xf32> to vector<1x512xf32>
    %c0_i32 = arith.constant 0 : i32
    %27 = arith.cmpi eq, %arg1, %c0_i32 : i32
    %28 = arith.extui %27 : i1 to i32
    %c0_i32_22 = arith.constant 0 : i32
    %29 = arith.cmpi ne, %28, %c0_i32_22 : i32
    scf.if %29 {
      %cst_29 = arith.constant 0xFF800000 : f32
      %36 = vector.broadcast %cst_29 : f32 to vector<1x512xf32>
      %c0_30 = arith.constant 0 : index
      %c0_31 = arith.constant 0 : index
      %c0_32 = arith.constant 0 : index
      %37 = vector.load %arg9[%c0_30, %c0_31, %c0_32] : memref<1x1x512xf32, #tpu.memory_space<vmem>>, vector<1x1x512xf32>
      %38 = vector.shape_cast %37 : vector<1x1x512xf32> to vector<1x512xf32>
      %39 = vector.shape_cast %36 : vector<1x512xf32> to vector<1x1x512xf32>
      tpu.vector_store %arg9[%c0_30, %c0_31, %c0_32], %39 {strides = array<i32>} : memref<1x1x512xf32, #tpu.memory_space<vmem>>, vector<1x1x512xf32>,
    } else {
    }
    %c0_23 = arith.constant 0 : index
    %c0_24 = arith.constant 0 : index
    %c0_25 = arith.constant 0 : index
    %30 = vector.load %arg9[%c0_23, %c0_24, %c0_25] : memref<1x1x512xf32, #tpu.memory_space<vmem>>, vector<1x1x512xf32>
    %31 = vector.shape_cast %30 : vector<1x1x512xf32> to vector<1x512xf32>
    %32 = arith.maximumf %31, %26 : vector<1x512xf32>
    %c0_26 = arith.constant 0 : index
    %c0_27 = arith.constant 0 : index
    %c0_28 = arith.constant 0 : index
    %33 = vector.load %arg9[%c0_26, %c0_27, %c0_28] : memref<1x1x512xf32, #tpu.memory_space<vmem>>, vector<1x1x512xf32>
    %34 = vector.shape_cast %33 : vector<1x1x512xf32> to vector<1x512xf32>
    %35 = vector.shape_cast %32 : vector<1x512xf32> to vector<1x1x512xf32>
    tpu.vector_store %arg9[%c0_26, %c0_27, %c0_28], %35 {strides = array<i32>} : memref<1x1x512xf32, #tpu.memory_space<vmem>>, vector<1x1x512xf32>,
    return
  }
  func.func @transform_0(%arg0: i32, %arg1: i32) -> (i32, i32, i32) {
    %c0_i32 = arith.constant 0 : i32
    %c0_i32_0 = arith.constant 0 : i32
    return %arg0, %arg1, %c0_i32 : i32, i32, i32
  }
  func.func @transform_1(%arg0: i32, %arg1: i32) -> (i32, i32) {
    %c0_i32 = arith.constant 0 : i32
    %c0_i32_0 = arith.constant 0 : i32
    %c0_i32_1 = arith.constant 0 : i32
    return %c0_i32, %c0_i32_0 : i32, i32
  }
  func.func @transform_2(%arg0: i32, %arg1: i32) -> (i32, i32, i32) {
    %c0_i32 = arith.constant 0 : i32
    %c0_i32_0 = arith.constant 0 : i32
    %c0_i32_1 = arith.constant 0 : i32
    return %arg0, %c0_i32, %c0_i32_0 : i32, i32, i32
  }
  func.func @transform_3(%arg0: i32, %arg1: i32) -> (i32, i32) {
    %c0_i32 = arith.constant 0 : i32
    %c0_i32_0 = arith.constant 0 : i32
    %c0_i32_1 = arith.constant 0 : i32
    return %c0_i32, %c0_i32_0 : i32, i32
  }
  func.func @transform_4(%arg0: i32, %arg1: i32) -> (i32, i32) {
    %c0_i32 = arith.constant 0 : i32
    %c0_i32_0 = arith.constant 0 : i32
    %c0_i32_1 = arith.constant 0 : i32
    return %c0_i32, %c0_i32_0 : i32, i32
  }
  func.func @transform_5(%arg0: i32, %arg1: i32) -> (i32, i32) {
    %c0_i32 = arith.constant 0 : i32
    %c0_i32_0 = arith.constant 0 : i32
    %c0_i32_1 = arith.constant 0 : i32
    return %c0_i32, %c0_i32_0 : i32, i32
  }
  func.func @transform_6(%arg0: i32, %arg1: i32) -> (i32, i32) {
    %c0_i32 = arith.constant 0 : i32
    %c0_i32_0 = arith.constant 0 : i32
    %c0_i32_1 = arith.constant 0 : i32
    return %c0_i32, %c0_i32_0 : i32, i32
  }
  func.func @transform_7(%arg0: i32, %arg1: i32) -> (i32, i32, i32) {
    %c0_i32 = arith.constant 0 : i32
    %c0_i32_0 = arith.constant 0 : i32
    %c0_i32_1 = arith.constant 0 : i32
    return %arg0, %c0_i32, %c0_i32_0 : i32, i32, i32
  }
}

</mosaic_0001>

<bundles_post_ra>
// kernel: _lambda_.2
= control target key start
LH: loop header
LB: loop body
LE: loop exit
PB: predicated region body
PF: predicated region fallthrough
CT: control target
= control target key end

     0   :  { %12 = vsyncpa [#allocation3], 0  ;;  %s2509_s24 = smov 0   ;;  %s2511_s25 = smov 0   ;;  %s2998_s0 = inlined_call_operand.vmem [shape: f32[2,128,8], index: 0, kind: input, shape index: {}]   ;;  %s2999_s1 = inlined_call_operand.vmem [shape: f32[8,16], index: 1, kind: input, shape index: {}]   ;;  %s3000_s2 = inlined_call_operand.hbm [shape: f32[1,16,64], index: 2, kind: input, shape index: {}]   ;;  %s3001_s3 = inlined_call_operand.vmem [shape: f32[1,64], index: 3, kind: input, shape index: {}]   ;;  %s3002_s4 = inlined_call_operand.vmem [shape: bf16[64,128], index: 4, kind: input, shape index: {}]   ;;  %s3003_s5 = inlined_call_operand.vmem [shape: f32[1,128], index: 5, kind: input, shape index: {}]   ;;  %s3004_s6 = inlined_call_operand.vmem [shape: bf16[128,1024], index: 6, kind: input, shape index: {}]   ;;  %s3005_s7 = inlined_call_operand.vmem [shape: f32[2,1,1024], index: 7, kind: output, shape index: {}]  }
   0x1   :  { %s2513_s26 = smov 0  }
   0x2 LB: > { %s2110_s27 = sadd.s32 4294967295, %s2462_s26   ;;  %s30_s28 = sadd.s32 1, %s2458_s25  ;;  %s2462_s26 = sphi %s2513_s26, %s18_s26   ;;  %s2458_s25 = sphi %s2511_s25, %s3015_s25   ;;  %s2454_s24 = sphi %s2509_s24, %s3014_s24  }
   0x3   : > { %p32_p0 = scmp.ge.s32.totalorder %s30_s28, 2  ;;  %p2112_p1 = scmp.ge.s32.totalorder %s2462_s26, 1 }
   0x4   : > { %p215_p2 = scmp.lt.s32.totalorder %s2462_s26, 3  ;;  %p2534_p4 = scmp.eq.s32.totalorder %s2110_s27, 0 }
   0x5   : > { %s3017_s28 = smov (%p32_p0, %s30_s28), 0  ;;  %s2464_s8 = smov [#allocation2]  }
   0x6   : > { %p2530_p3 = pnand %p2112_p1, %p215_p2  ;;  %s230_s9 = sshll.u32 %s2464_s8, 4  ;;  %s231_s9 = int_to_ptr.vmem [resolvable:$true] %s230_s9 }
   0x7   : > { %s3010_s30 = scalar_select %p2534_p4, 1, 0 }
   0x8   : > { %s3009_s29 = scalar_select %p2530_p3, 1, 0 }
   0x9   : > { %p2368_p5 = pneg %p2530_p3  ;;  %s2408_s13 = scalar_lea.hbm %s3000_s2, 256 }
   0xa   : > { %p2409_p7 = scmp.ne.s32.totalorder %s3000_s2, %s2408_s13  ;;  %p2415_p11 = scmp.lt.u32.totalorder %s2408_s13, %s3000_s2 }
   0xb   : > { %p2542_p6 = pnand %p2534_p4, %p2368_p5 }
   0xd   : > { %p2410_p8 = pneg %p2542_p6 }
   0xf   : > { %p2411_p9 = pnand %p2410_p8, %p2409_p7 }
  0x11   : > { %p2412_p10 = pneg %p2411_p9 }
  0x13   : > { %p2417_p12 = pnand %p2415_p11, %p2412_p10 }
  0x15   : > { %2420 = shalt.err (!%p2417_p12)
}
  0x16   : > { %s2421_s18 = scalar_lea.vmem %s231_s9, 256  ;;  %p2429_p2 = scmp.lt.s32.totalorder %s231_s9, %s231_s9 }
  0x17   : > { %p2422_p13 = scmp.ne.s32.totalorder %s231_s9, %s2421_s18  ;;  %p2430_p5 = scmp.lt.s32.totalorder %s2421_s18, %s2421_s18 }
  0x19   : > { %p2424_p0 = pnand %p2422_p13, %p2410_p8  ;;  %p2431_p4 = por %p2430_p5, %p2429_p2 }
  0x1b   : > { %p2425_p1 = pneg %p2424_p0 }
  0x1d   : > { %p2432_p3 = pnand %p2431_p4, %p2425_p1 }
  0x1f   : > { %2435 = shalt.err (!%p2432_p3)
}
  0x20   : > { %s2465_s19 = smov 128   ;;  %s2466_s20 = smov 8  }
  0x21   : > { %2371 = dma.hbm_to_vmem [thread:$0]  (!%p2542_p6), %s3000_s2, 256, %s231_s9, [#allocation3], %s2465_s19, %s2465_s19, %s2466_s20  }
  0x22   : > { %p3012_p7 = scmp.ne.s32.totalorder %s3009_s29, 0 }
  0x23   : > { %p3013_p9 = scmp.ne.s32.totalorder (!%p3012_p7), %s3010_s30, 0 }
  0x24   : > { %271 = sbr.rel (%p3012_p7) target bundleno = 1071 (0x42f), region = 48 }
  0x2b   : > { %2449 = dma.done.wait (%p3013_p9), [#allocation3], 256  }
  0x2c   : > { %2451 = vsyncadd (%p3013_p9), [#allocation3], 4294967040  ;;  %p307_p3 = scmp.lt.s32.totalorder %s2454_s24, 1  ;;  %vm338_vm0 = vcmask 64512   ;;  %v337_v0 = vld [vmem:[%s2999_s1] sm:$0xff]  ;;  %v548_v11 = vld [vmem:[#allocation2] sm:$0xff] }
  0x2d   : > { %2280 = vmatprep.subr.mxu0 %v337_v0  ;;  %2362 = vmatprep.subr.mxu1 %v337_v0  ;;  %v549_v13 = vld [vmem:[#allocation2 + $0x8] sm:$0xff]  ;;  %v2404_v20 = vld [vmem:[%s3002_s4] sm:$0xff]   ;;  %v2405_v21 = vld [vmem:[%s3002_s4 + $0x8] sm:$0xff]   ;;  %vm557_vm1 = vcmask 130048   ;;  %vm814_vm2 = vcmask 523264  }
  0x2e   : > { %s3019_s24 = smov (!%p307_p3, %s2454_s24), 1  ;;  %2281 = vmatpush3.msra.mxu0 %v337_v0  ;;  %2363 = vmatpush3.msra.mxu1 %v337_v0  ;;  %v2358_v14 = vpack.c.bf16 %v549_v13, %v548_v11  ;;  %v2406_v54 = vld [vmem:[%s3002_s4 + $0x10] sm:$0xff]   ;;  %v2407_v55 = vld [vmem:[%s3002_s4 + $0x18] sm:$0xff]   ;;  %v960_v56 = vld [vmem:[%s3004_s6] sm:$0xff] }
  0x2f   : > { %s2232_s23 = sshll.u32 %s3019_s24, 7  ;;  %2334 = vmatprep.subr.bf16.mxu0 %v2404_v20  ;;  %v964_v57 = vld [vmem:[%s3004_s6 + $0x20] sm:$0xff]  ;;  %v2650_v58 = vld [vmem:[%s3004_s6 + $0x8] sm:$0xff]  ;;  %s2119_s17 = sshll.u32 %s3019_s24, 3 }
  0x30   : > { %s2576_s9 = scalar_lea.vmem %s2998_s0, %s2232_s23  ;;  %2359 = vmatprep.subr.bf16.mxu1 %v2358_v14  ;;  %v2166_v59 = vcombine.low %v960_v56, %v964_v57  ;;  %v2167_v60 = vcombine.high %v960_v56, %v964_v57  ;;  %v2655_v61 = vld [vmem:[%s3004_s6 + $0x28] sm:$0xff]  ;;  %v968_v62 = vld [vmem:[%s3004_s6 + $0x40] sm:$0xff]  ;;  %s319_s20 = scalar_lea.vmem %s3005_s7, %s2119_s17 }
  0x31   : > { %v321_v1 = vld [vmem:[%s2576_s9] sm:$0xff]  ;;  %v322_v2 = vld [vmem:[%s2576_s9 + $0x8] sm:$0xff]  ;;  %v323_v3 = vld [vmem:[%s2576_s9 + $0x10] sm:$0xff]  ;;  %v2168_v0 = vcombine.low %v2650_v58, %v2655_v61 }
  0x32   : > { %2282 = vmatprep.mubr.msk.f32.mxu0 %vm338_vm0, %v321_v1  ;;  %v329_v4 = vld [vmem:[%s2576_s9 + $0x40] sm:$0xff]  ;;  %v330_v5 = vld [vmem:[%s2576_s9 + $0x48] sm:$0xff]  ;;  %v331_v6 = vld [vmem:[%s2576_s9 + $0x50] sm:$0xff]  ;;  %v2169_v1 = vcombine.high %v2650_v58, %v2655_v61 }
  0x33   : > { %2283 = vmatmul.mubr.msk.f32.vlgmr.msra.gmra.mrb[0].mxu0 %vm338_vm0, %v322_v2  ;;  %v324_v7 = vld [vmem:[%s2576_s9 + $0x18] sm:$0xff]  ;;  %v325_v8 = vld [vmem:[%s2576_s9 + $0x20] sm:$0xff]  ;;  %2294 = vmatprep.mubr.msk.f32.mxu1 %vm338_vm0, %v329_v4  ;;  %v326_v12 = vld [vmem:[%s2576_s9 + $0x28] sm:$0xff] }
  0x34   : > { %2285 = vmatprep.mubr.msk.f32.mxu0 %vm338_vm0, %v323_v3  ;;  %2295 = vmatmul.mubr.msk.f32.vlgmr.msra.gmra.mrb[0].mxu1 %vm338_vm0, %v330_v5  ;;  %v332_v9 = vld [vmem:[%s2576_s9 + $0x58] sm:$0xff]  ;;  %v333_v10 = vld [vmem:[%s2576_s9 + $0x60] sm:$0xff]  ;;  %v327_v15 = vld [vmem:[%s2576_s9 + $0x30] sm:$0xff] }
  0x35   : > { %2297 = vmatprep.mubr.msk.f32.mxu1 %vm338_vm0, %v331_v6  ;;  %v334_v16 = vld [vmem:[%s2576_s9 + $0x68] sm:$0xff]  ;;  %2361 = vmatpush3.bf16.msra.mxu1 %v2358_v14  ;;  %v335_v17 = vld [vmem:[%s2576_s9 + $0x70] sm:$0xff]  ;;  %v328_v18 = vld [vmem:[%s2576_s9 + $0x38] sm:$0xff] }
  0x36   : > { %v336_v19 = vld [vmem:[%s2576_s9 + $0x78] sm:$0xff]  ;;  %2335 = vmatpush3.bf16.msra.mxu0 %v2404_v20  ;;  %v972_v63 = vld [vmem:[%s3004_s6 + $0x60] sm:$0xff]  ;;  %1344 = vmatprep.subr.bf16.mxu1 %v2167_v60 }
  0x37   : > { %2286 = vmatmul.mubr.msk.f32.gmra.mrb[2].mxu0 %vm338_vm0, %v324_v7  ;;  %2336 = vmatprep.subr.bf16.mxu0 %v2405_v21  ;;  %v2175_v2 = vcombine.high %v968_v62, %v972_v63  ;;  %v976_v3 = vld [vmem:[%s3004_s6 + $0x80] sm:$0xff]  ;;  %v2174_v5 = vcombine.low %v968_v62, %v972_v63 }
  0x38   : > { %2288 = vmatprep.mubr.msk.f32.mxu0 %vm338_vm0, %v325_v8  ;;  %2298 = vmatmul.mubr.msk.f32.gmra.mrb[2].mxu1 %vm338_vm0, %v332_v9  ;;  %v980_v4 = vld [vmem:[%s3004_s6 + $0xa0] sm:$0xff] }
  0x39   : > { %2300 = vmatprep.mubr.msk.f32.mxu1 %vm338_vm0, %v333_v10  ;;  %v2183_v6 = vcombine.high %v976_v3, %v980_v4  ;;  %v984_v7 = vld [vmem:[%s3004_s6 + $0xc0] sm:$0xff]  ;;  %v2182_v9 = vcombine.low %v976_v3, %v980_v4 }
  0x3a   : > { %2337 = vmatpush3.bf16.msra.mxu0 %v2405_v21  ;;  %v988_v8 = vld [vmem:[%s3004_s6 + $0xe0] sm:$0xff] }
  0x3b   : > { %2289 = vmatmul.mubr.msk.f32.gmra.mrb[4].mxu0 %vm338_vm0, %v326_v12  ;;  %2338 = vmatprep.subr.bf16.mxu0 %v2406_v54  ;;  %v2191_v10 = vcombine.high %v984_v7, %v988_v8  ;;  %v992_v11 = vld [vmem:[%s3004_s6 + $0x100] sm:$0xff]  ;;  %v2190_v13 = vcombine.low %v984_v7, %v988_v8 }
  0x3c   : > { %2291 = vmatprep.mubr.msk.f32.mxu0 %vm338_vm0, %v327_v15  ;;  %2301 = vmatmul.mubr.msk.f32.gmra.mrb[4].mxu1 %vm338_vm0, %v334_v16  ;;  %v996_v12 = vld [vmem:[%s3004_s6 + $0x120] sm:$0xff] }
  0x3d   : > { %2303 = vmatprep.mubr.msk.f32.mxu1 %vm338_vm0, %v335_v17  ;;  %v2199_v14 = vcombine.high %v992_v11, %v996_v12  ;;  %v1000_v15 = vld [vmem:[%s3004_s6 + $0x140] sm:$0xff]  ;;  %v2198_v17 = vcombine.low %v992_v11, %v996_v12  ;;  %v1001_v12 = vld [vmem:[%s3004_s6 + $0x148] sm:$0xff] }
  0x3e   : > { %2339 = vmatpush3.bf16.msra.mxu0 %v2406_v54  ;;  %v1004_v16 = vld [vmem:[%s3004_s6 + $0x160] sm:$0xff]  ;;  %v985_v54 = vld [vmem:[%s3004_s6 + $0xc8] sm:$0xff] }
  0x3f   : > { %2292 = vmatmul.mubr.msk.f32.gmra.mrb[6].mxu0 %vm338_vm0, %v328_v18  ;;  %2340 = vmatprep.subr.bf16.mxu0 %v2407_v55  ;;  %v2207_v18 = vcombine.high %v1000_v15, %v1004_v16  ;;  %v2694_v20 = vld [vmem:[%s3001_s3] ss:$0 sm:$0xff] }
  0x40   : > { %2304 = vmatmul.mubr.msk.f32.gmra.mrb[6].mxu1 %vm338_vm0, %v336_v19  ;;  %v2206_v19 = vcombine.low %v1000_v15, %v1004_v16 }
  0x42   : > { %2341 = vmatpush3.bf16.msra.mxu0 %v2407_v55  ;;  %v989_v55 = vld [vmem:[%s3004_s6 + $0xe8] sm:$0xff] }
  0x43   : > { %1457 = vmatprep.subr.bf16.mxu0 %v2169_v1  ;;  %v2193_v63 = vcombine.high %v985_v54, %v989_v55  ;;  %v993_v1 = vld [vmem:[%s3004_s6 + $0x108] sm:$0xff]  ;;  %v2192_v7 = vcombine.low %v985_v54, %v989_v55  ;;  %v967_v55 = vld [vmem:[%s3004_s6 + $0x38] sm:$0xff] }
 0x106   : > { %v2284_v22 = vpop.f32.mrb[0].mxu0 }
 0x107   : > { %v453_v23 = vpop.f32.mrb[1].mxu0  ;;  %v2296_v25 = vpop.f32.mrb[0].mxu1  ;;  %v533_v26 = vmax.f32 %v2284_v22, 0.0 }
 0x108   : > { %v532_v24 = vmax.f32 %v453_v23, 0.0  ;;  %v493_v27 = vpop.f32.mrb[1].mxu1  ;;  %v541_v47 = vmax.f32 %v2296_v25, 0.0 }
 0x109   : > { %v540_v44 = vmax.f32 %v493_v27, 0.0 }
 0x10a   : > { %v2287_v28 = vpop.f32.mrb[2].mxu0  ;;  %2310 = vmatprep.mubr.msk.f32.mxu1 %vm557_vm1, %v532_v24 }
 0x10b   : > { %v463_v29 = vpop.f32.mrb[3].mxu0  ;;  %2311 = vmatmul.mubr.msk.f32.vlgmr.msra.gmra.mrb[8].mxu1 %vm557_vm1, %v533_v26  ;;  %v2299_v31 = vpop.f32.mrb[2].mxu1  ;;  %v535_v32 = vmax.f32 %v2287_v28, 0.0 }
 0x10c   : > { %v534_v30 = vmax.f32 %v463_v29, 0.0  ;;  %v503_v33 = vpop.f32.mrb[3].mxu1  ;;  %v543_v49 = vmax.f32 %v2299_v31, 0.0  ;;  %1345 = vmatpush1.bf16.msra.mxu1 %v2166_v59 }
 0x10d   : > { %v542_v48 = vmax.f32 %v503_v33, 0.0  ;;  %1346 = vmatprep.subr.bf16.mxu1 %v2175_v2  ;;  %v969_v33 = vld [vmem:[%s3004_s6 + $0x48] sm:$0xff] }
 0x10e   : > { %2313 = vmatprep.mubr.msk.f32.mxu1 %vm557_vm1, %v534_v30  ;;  %v2290_v34 = vpop.f32.mrb[4].mxu0  ;;  %v997_v2 = vld [vmem:[%s3004_s6 + $0x128] sm:$0xff] }
 0x10f   : > { %2314 = vmatmul.mubr.msk.f32.gmra.mrb[10].mxu1 %vm557_vm1, %v535_v32  ;;  %v537_v35 = vmax.f32 %v2290_v34, 0.0  ;;  %v473_v36 = vpop.f32.mrb[5].mxu0  ;;  %v2302_v38 = vpop.f32.mrb[4].mxu1  ;;  %v973_v34 = vld [vmem:[%s3004_s6 + $0x68] sm:$0xff] }
 0x110   : > { %v536_v37 = vmax.f32 %v473_v36, 0.0  ;;  %v513_v39 = vpop.f32.mrb[5].mxu1  ;;  %v545_v51 = vmax.f32 %v2302_v38, 0.0  ;;  %1347 = vmatpush1.bf16.msra.mxu1 %v2174_v5 }
 0x111   : > { %v544_v50 = vmax.f32 %v513_v39, 0.0  ;;  %1348 = vmatprep.subr.bf16.mxu1 %v2183_v6 }
 0x112   : > { %v2293_v40 = vpop.f32.mrb[6].mxu0  ;;  %2316 = vmatprep.mubr.msk.f32.mxu1 %vm557_vm1, %v536_v37 }
 0x113   : > { %v539_v41 = vmax.f32 %v2293_v40, 0.0  ;;  %v483_v42 = vpop.f32.mrb[7].mxu0  ;;  %2317 = vmatmul.mubr.msk.f32.gmra.mrb[12].mxu1 %vm557_vm1, %v537_v35  ;;  %v2305_v45 = vpop.f32.mrb[6].mxu1 }
 0x114   : > { %v538_v43 = vmax.f32 %v483_v42, 0.0  ;;  %v523_v46 = vpop.f32.mrb[7].mxu1  ;;  %v547_v53 = vmax.f32 %v2305_v45, 0.0  ;;  %1349 = vmatpush1.bf16.msra.mxu1 %v2182_v9 }
 0x115   : > { %v546_v52 = vmax.f32 %v523_v46, 0.0  ;;  %1350 = vmatprep.subr.bf16.mxu1 %v2191_v10  ;;  %v2201_v10 = vcombine.high %v993_v1, %v997_v2 }
 0x116   : > { %2319 = vmatprep.mubr.msk.f32.mxu1 %vm557_vm1, %v538_v43  ;;  %v977_v43 = vld [vmem:[%s3004_s6 + $0x88] sm:$0xff] }
 0x117   : > { %2320 = vmatmul.mubr.msk.f32.gmra.mrb[14].mxu1 %vm557_vm1, %v539_v41  ;;  %v2177_v41 = vcombine.high %v969_v33, %v973_v34 }
 0x118   : > { %2322 = vmatprep.mubr.msk.f32.mxu1 %vm557_vm1, %v540_v44  ;;  %1351 = vmatpush1.bf16.msra.mxu1 %v2190_v13  ;;  %v981_v44 = vld [vmem:[%s3004_s6 + $0xa8] sm:$0xff] }
 0x119   : > { %1352 = vmatprep.subr.bf16.mxu1 %v2199_v14  ;;  %v2184_v60 = vcombine.low %v977_v43, %v981_v44  ;;  %v1005_v13 = vld [vmem:[%s3004_s6 + $0x168] sm:$0xff] }
 0x11b   : > { %2323 = vmatmul.mubr.msk.f32.gmra.mrb[16].mxu1 %vm557_vm1, %v541_v47 }
 0x11c   : > { %2325 = vmatprep.mubr.msk.f32.mxu1 %vm557_vm1, %v542_v48  ;;  %1353 = vmatpush1.bf16.msra.mxu1 %v2198_v17 }
 0x11d   : > { %1354 = vmatprep.subr.bf16.mxu1 %v2207_v18  ;;  %v2200_v18 = vcombine.low %v993_v1, %v997_v2 }
 0x11f   : > { %2326 = vmatmul.mubr.msk.f32.gmra.mrb[18].mxu1 %vm557_vm1, %v543_v49  ;;  %v2176_v49 = vcombine.low %v969_v33, %v973_v34  ;;  %v1008_v34 = vld [vmem:[%s3004_s6 + $0x180] sm:$0xff] }
 0x120   : > { %2328 = vmatprep.mubr.msk.f32.mxu1 %vm557_vm1, %v544_v50  ;;  %1355 = vmatpush1.bf16.msra.mxu1 %v2206_v19 }
 0x123   : > { %2329 = vmatmul.mubr.msk.f32.gmra.mrb[20].mxu1 %vm557_vm1, %v545_v51 }
 0x124   : > { %2331 = vmatprep.mubr.msk.f32.mxu1 %vm557_vm1, %v546_v52  ;;  %v2185_v52 = vcombine.high %v977_v43, %v981_v44  ;;  %v1017_v43 = vld [vmem:[%s3004_s6 + $0x1c8] sm:$0xff] }
 0x127   : > { %2332 = vmatmul.mubr.msk.f32.gmra.mrb[22].mxu1 %vm557_vm1, %v547_v53 }
 0x1de   : > { %v2312_v21 = vpop.f32.mrb[8].mxu1 }
 0x1df   : > { %v678_v22 = vadd.f32 %v2312_v21, %v2694_v20  ;;  %v672_v23 = vpop.f32.mrb[9].mxu1 }
 0x1e0   : > { %v673_v24 = vadd.f32 %v2694_v20, %v672_v23 }
 0x1e1   : > { %v752_v25 = vmax.f32 %v678_v22, 0.0  ;;  %v2209_v22 = vcombine.high %v1001_v12, %v1005_v13 }
 0x1e2   : > { %v751_v26 = vmax.f32 %v673_v24, 0.0  ;;  %v2315_v27 = vpop.f32.mrb[10].mxu1 }
 0x1e3   : > { %v688_v28 = vadd.f32 %v2315_v27, %v2694_v20  ;;  %v682_v29 = vpop.f32.mrb[11].mxu1 }
 0x1e4   : > { %v767_v30 = vpack.c.bf16 %v752_v25, %v751_v26  ;;  %v683_v31 = vadd.f32 %v2694_v20, %v682_v29 }
 0x1e5   : > { %v754_v32 = vmax.f32 %v688_v28, 0.0  ;;  %v2208_v28 = vcombine.low %v1001_v12, %v1005_v13 }
 0x1e6   : > { %v753_v35 = vmax.f32 %v683_v31, 0.0  ;;  %2342 = vmatprep.mubr.msk.bf16.mxu0 %vm814_vm2, %v767_v30  ;;  %v2318_v36 = vpop.f32.mrb[12].mxu1 }
 0x1e7   : > { %v698_v37 = vadd.f32 %v2318_v36, %v2694_v20  ;;  %v692_v38 = vpop.f32.mrb[13].mxu1 }
 0x1e8   : > { %v768_v39 = vpack.c.bf16 %v754_v32, %v753_v35  ;;  %v693_v40 = vadd.f32 %v2694_v20, %v692_v38  ;;  %v1012_v35 = vld [vmem:[%s3004_s6 + $0x1a0] sm:$0xff] }
 0x1e9   : > { %v756_v42 = vmax.f32 %v698_v37, 0.0  ;;  %v2215_v36 = vcombine.high %v1008_v34, %v1012_v35  ;;  %v1013_v37 = vld [vmem:[%s3004_s6 + $0x1a8] sm:$0xff]  ;;  %v2214_v38 = vcombine.low %v1008_v34, %v1012_v35  ;;  %v986_v35 = vld [vmem:[%s3004_s6 + $0xd0] sm:$0xff] }
 0x1ea   : > { %2343 = vmatmul.mubr.msk.bf16.vlgmr.msra.gmra.mrb[8].mxu0 %vm814_vm2, %v768_v39  ;;  %v755_v45 = vmax.f32 %v693_v40, 0.0  ;;  %v2321_v46 = vpop.f32.mrb[14].mxu1 }
 0x1eb   : > { %v708_v47 = vadd.f32 %v2321_v46, %v2694_v20  ;;  %v702_v48 = vpop.f32.mrb[15].mxu1  ;;  %1458 = vmatpush1.bf16.msra.mxu0 %v2168_v0  ;;  %1356 = vmatprep.subr.bf16.mxu1 %v2215_v36  ;;  %v990_v36 = vld [vmem:[%s3004_s6 + $0xf0] sm:$0xff] }
 0x1ec   : > { %v769_v50 = vpack.c.bf16 %v756_v42, %v755_v45  ;;  %v703_v51 = vadd.f32 %v2694_v20, %v702_v48  ;;  %1459 = vmatprep.subr.bf16.mxu0 %v2177_v41  ;;  %1357 = vmatpush1.bf16.msra.mxu1 %v2214_v38  ;;  %v1016_v41 = vld [vmem:[%s3004_s6 + $0x1c0] sm:$0xff]  ;;  %v1021_v45 = vld [vmem:[%s3004_s6 + $0x1e8] sm:$0xff]  ;;  %v991_v38 = vld [vmem:[%s3004_s6 + $0xf8] sm:$0xff] }
 0x1ed   : > { %v758_v53 = vmax.f32 %v708_v47, 0.0  ;;  %v1020_v42 = vld [vmem:[%s3004_s6 + $0x1e0] sm:$0xff]  ;;  %v2224_v47 = vcombine.low %v1017_v43, %v1021_v45  ;;  %v2225_v48 = vcombine.high %v1017_v43, %v1021_v45 }
 0x1ee   : > { %v757_v56 = vmax.f32 %v703_v51, 0.0  ;;  %2346 = vmatprep.mubr.msk.bf16.mxu0 %vm814_vm2, %v769_v50  ;;  %v2324_v57 = vpop.f32.mrb[16].mxu1  ;;  %v2223_v44 = vcombine.high %v1016_v41, %v1020_v42  ;;  %v2222_v46 = vcombine.low %v1016_v41, %v1020_v42  ;;  %v966_v50 = vld [vmem:[%s3004_s6 + $0x30] sm:$0xff]  ;;  %v963_v51 = vld [vmem:[%s3004_s6 + $0x18] sm:$0xff] }
 0x1ef   : > { %v718_v58 = vadd.f32 %v2324_v57, %v2694_v20  ;;  %v712_v59 = vpop.f32.mrb[17].mxu1  ;;  %1460 = vmatpush1.bf16.msra.mxu0 %v2176_v49  ;;  %v962_v49 = vld [vmem:[%s3004_s6 + $0x10] sm:$0xff]  ;;  %v2173_v57 = vcombine.high %v963_v51, %v967_v55 }
 0x1f0   : > { %v770_v61 = vpack.c.bf16 %v758_v53, %v757_v56  ;;  %v713_v62 = vadd.f32 %v2694_v20, %v712_v59  ;;  %1461 = vmatprep.subr.bf16.mxu0 %v2185_v52  ;;  %1358 = vmatprep.subr.bf16.mxu1 %v2223_v44  ;;  %v2467_v52 = vmov 0   ;;  %v2170_v53 = vcombine.low %v962_v49, %v966_v50 }
 0x1f1   : > { %v760_v0 = vmax.f32 %v718_v58, 0.0  ;;  %1359 = vmatpush1.bf16.msra.mxu1 %v2222_v46  ;;  %1376 = vmatprep.mubr.bf16.mxu1 %v2467_v52  ;;  %v2171_v54 = vcombine.high %v962_v49, %v966_v50  ;;  %v2172_v56 = vcombine.low %v963_v51, %v967_v55  ;;  %v2794_v58 = vld [vmem:[%s3003_s5] ss:$0 sm:$0xff]  ;;  %v2195_v46 = vcombine.high %v986_v35, %v990_v36  ;;  %v998_v51 = vld [vmem:[%s3004_s6 + $0x130] sm:$0xff] }
 0x1f2   : > { %2347 = vmatmul.mubr.msk.bf16.gmra.mrb[12].mxu0 %vm814_vm2, %v770_v61  ;;  %v759_v3 = vmax.f32 %v713_v62, 0.0  ;;  %v2327_v4 = vpop.f32.mrb[18].mxu1 }
 0x1f3   : > { %v728_v5 = vadd.f32 %v2327_v4, %v2694_v20  ;;  %v722_v6 = vpop.f32.mrb[19].mxu1  ;;  %1462 = vmatpush1.bf16.msra.mxu0 %v2184_v60  ;;  %1570 = vmatprep.subr.bf16.mxu1 %v2171_v54  ;;  %v999_v54 = vld [vmem:[%s3004_s6 + $0x138] sm:$0xff] }
 0x1f4   : > { %v771_v8 = vpack.c.bf16 %v760_v0, %v759_v3  ;;  %v723_v9 = vadd.f32 %v2694_v20, %v722_v6  ;;  %1463 = vmatprep.subr.bf16.mxu0 %v2193_v63 }
 0x1f5   : > { %v762_v11 = vmax.f32 %v728_v5, 0.0  ;;  %v970_v5 = vld [vmem:[%s3004_s6 + $0x50] sm:$0xff] }
 0x1f6   : > { %v761_v14 = vmax.f32 %v723_v9, 0.0  ;;  %2350 = vmatprep.mubr.msk.bf16.mxu0 %vm814_vm2, %v771_v8  ;;  %v2330_v15 = vpop.f32.mrb[20].mxu1  ;;  %v974_v8 = vld [vmem:[%s3004_s6 + $0x70] sm:$0xff]  ;;  %v971_v9 = vld [vmem:[%s3004_s6 + $0x58] sm:$0xff] }
 0x1f7   : > { %v738_v16 = vadd.f32 %v2330_v15, %v2694_v20  ;;  %v732_v17 = vpop.f32.mrb[21].mxu1  ;;  %1464 = vmatpush1.bf16.msra.mxu0 %v2192_v7 }
 0x1f8   : > { %v772_v19 = vpack.c.bf16 %v762_v11, %v761_v14  ;;  %v733_v21 = vadd.f32 %v2694_v20, %v732_v17  ;;  %1465 = vmatprep.subr.bf16.mxu0 %v2201_v10  ;;  %v975_v10 = vld [vmem:[%s3004_s6 + $0x78] sm:$0xff]  ;;  %v978_v14 = vld [vmem:[%s3004_s6 + $0x90] sm:$0xff]  ;;  %v2179_v17 = vcombine.high %v970_v5, %v974_v8 }
 0x1f9   : > { %v764_v23 = vmax.f32 %v738_v16, 0.0 }
 0x1fa   : > { %2351 = vmatmul.mubr.msk.bf16.gmra.mrb[16].mxu0 %vm814_vm2, %v772_v19  ;;  %v763_v24 = vmax.f32 %v733_v21, 0.0  ;;  %v2333_v25 = vpop.f32.mrb[22].mxu1  ;;  %v982_v19 = vld [vmem:[%s3004_s6 + $0xb0] sm:$0xff]  ;;  %v979_v21 = vld [vmem:[%s3004_s6 + $0x98] sm:$0xff] }
 0x1fb   : > { %v748_v26 = vadd.f32 %v2333_v25, %v2694_v20  ;;  %v742_v27 = vpop.f32.mrb[23].mxu1  ;;  %1466 = vmatpush1.bf16.msra.mxu0 %v2200_v18  ;;  %v2181_v18 = vcombine.high %v971_v9, %v975_v10  ;;  %v2186_v41 = vcombine.low %v978_v14, %v982_v19 }
 0x1fc   : > { %v773_v29 = vpack.c.bf16 %v764_v23, %v763_v24  ;;  %v743_v30 = vadd.f32 %v2694_v20, %v742_v27  ;;  %1467 = vmatprep.subr.bf16.mxu0 %v2209_v22  ;;  %v1009_v20 = vld [vmem:[%s3004_s6 + $0x188] sm:$0xff]  ;;  %v983_v22 = vld [vmem:[%s3004_s6 + $0xb8] sm:$0xff] }
 0x1fd   : > { %v766_v31 = vmax.f32 %v748_v26, 0.0  ;;  %v2216_v39 = vcombine.low %v1009_v20, %v1013_v37  ;;  %v2217_v40 = vcombine.high %v1009_v20, %v1013_v37  ;;  %v987_v37 = vld [vmem:[%s3004_s6 + $0xd8] sm:$0xff]  ;;  %v2188_v42 = vcombine.low %v979_v21, %v983_v22 }
 0x1fe   : > { %v765_v32 = vmax.f32 %v743_v30, 0.0  ;;  %2354 = vmatprep.mubr.msk.bf16.mxu0 %vm814_vm2, %v773_v29  ;;  %v2180_v29 = vcombine.low %v971_v9, %v975_v10 }
 0x1ff   : > { %1468 = vmatpush1.bf16.msra.mxu0 %v2208_v28  ;;  %v2178_v28 = vcombine.low %v970_v5, %v974_v8  ;;  %v1003_v5 = vld [vmem:[%s3004_s6 + $0x158] sm:$0xff] }
 0x200   : > { %v774_v33 = vpack.c.bf16 %v766_v31, %v765_v32  ;;  %1469 = vmatprep.subr.bf16.mxu0 %v2217_v40  ;;  %v2187_v32 = vcombine.high %v978_v14, %v982_v19 }
 0x202   : > { %2355 = vmatmul.mubr.msk.bf16.gmra.mrb[20].mxu0 %vm814_vm2, %v774_v33  ;;  %v2189_v33 = vcombine.high %v979_v21, %v983_v22  ;;  %v1014_v22 = vld [vmem:[%s3004_s6 + $0x1b0] sm:$0xff] }
 0x203   : > { %1470 = vmatpush1.bf16.msra.mxu0 %v2216_v39  ;;  %1489 = vmatprep.mubr.bf16.mxu0 %v2467_v52 }
 0x204   : > { %1471 = vmatprep.subr.bf16.mxu0 %v2225_v48  ;;  %v994_v48 = vld [vmem:[%s3004_s6 + $0x110] sm:$0xff] }
 0x205   : > { %v2202_v9 = vcombine.low %v994_v48, %v998_v51 }
 0x207   : > { %1472 = vmatpush1.bf16.msra.mxu0 %v2224_v47  ;;  %v2197_v47 = vcombine.high %v987_v37, %v991_v38 }
 0x208   : > { %1683 = vmatprep.subr.bf16.mxu0 %v2173_v57 }
 0x2bd   : > { %v2344_v59 = vpop.f32.mrb[8].mxu0 }
 0x2be   : > { %v882_v60 = vadd.f32 %v2344_v59, %v2794_v58  ;;  %v873_v61 = vpop.f32.mrb[9].mxu0 }
 0x2bf   : > { %v874_v62 = vadd.f32 %v2794_v58, %v873_v61  ;;  %v2345_v63 = vpop.f32.mrb[10].mxu0  ;;  %v2194_v61 = vcombine.low %v986_v35, %v990_v36  ;;  %v1018_v35 = vld [vmem:[%s3004_s6 + $0x1d0] sm:$0xff] }
 0x2c0   : > { %v885_v0 = vadd.f32 %v2345_v63, %v2794_v58  ;;  %v876_v1 = vpop.f32.mrb[11].mxu0  ;;  %v938_v3 = vmax.f32 %v882_v60, 0.0  ;;  %v1022_v36 = vld [vmem:[%s3004_s6 + $0x1f0] sm:$0xff] }
 0x2c1   : > { %v877_v2 = vadd.f32 %v2794_v58, %v876_v1  ;;  %v936_v6 = vmax.f32 %v874_v62, 0.0  ;;  %v2196_v62 = vcombine.low %v987_v37, %v991_v38  ;;  %v1023_v37 = vld [vmem:[%s3004_s6 + $0x1f8] sm:$0xff] }
 0x2c2   : > { %v939_v4 = vmax.f32 %v885_v0, 0.0  ;;  %v2203_v0 = vcombine.high %v994_v48, %v998_v51 }
 0x2c3   : > { %v937_v7 = vmax.f32 %v877_v2, 0.0  ;;  %v1002_v2 = vld [vmem:[%s3004_s6 + $0x150] sm:$0xff] }
 0x2c4   : > { %v2812_v11 = vpack.c.bf16 %v939_v4, %v938_v3  ;;  %v1006_v4 = vld [vmem:[%s3004_s6 + $0x170] sm:$0xff] }
 0x2c5   : > { %v2814_v12 = vpack.c.bf16 %v937_v7, %v936_v6  ;;  %v2348_v13 = vpop.f32.mrb[12].mxu0  ;;  %v1007_v6 = vld [vmem:[%s3004_s6 + $0x178] sm:$0xff] }
 0x2c6   : > { %v898_v15 = vadd.f32 %v2348_v13, %v2794_v58  ;;  %v889_v16 = vpop.f32.mrb[13].mxu0 }
 0x2c7   : > { %1377 = vmatmul.mubr.bf16.vlgmr.msra.gmra.mrb[24].mxu1 %v2814_v12  ;;  %1490 = vmatmul.mubr.bf16.vlgmr.msra.gmra.mrb[24].mxu0 %v2814_v12  ;;  %v890_v23 = vadd.f32 %v2794_v58, %v889_v16  ;;  %v2349_v24 = vpop.f32.mrb[14].mxu0  ;;  %v2211_v16 = vcombine.high %v1002_v2, %v1006_v4 }
 0x2c8   : > { %v942_v25 = vmax.f32 %v898_v15, 0.0  ;;  %1571 = vmatpush1.bf16.msra.mxu1 %v2170_v53  ;;  %1684 = vmatpush1.bf16.msra.mxu0 %v2172_v56  ;;  %v901_v26 = vadd.f32 %v2349_v24, %v2794_v58  ;;  %v892_v27 = vpop.f32.mrb[15].mxu0  ;;  %v995_v53 = vld [vmem:[%s3004_s6 + $0x118] sm:$0xff] }
 0x2c9   : > { %v940_v30 = vmax.f32 %v890_v23, 0.0  ;;  %v893_v31 = vadd.f32 %v2794_v58, %v892_v27  ;;  %1386 = vmatprep.mubr.bf16.mxu1 %v2467_v52  ;;  %1499 = vmatprep.mubr.bf16.mxu0 %v2467_v52  ;;  %v2205_v1 = vcombine.high %v995_v53, %v999_v54  ;;  %v2204_v10 = vcombine.low %v995_v53, %v999_v54  ;;  %v1011_v23 = vld [vmem:[%s3004_s6 + $0x198] sm:$0xff] }
 0x2ca   : > { %v943_v34 = vmax.f32 %v901_v26, 0.0  ;;  %1572 = vmatprep.subr.bf16.mxu1 %v2179_v17  ;;  %1685 = vmatprep.subr.bf16.mxu0 %v2181_v18  ;;  %v2213_v17 = vcombine.high %v1003_v5, %v1007_v6  ;;  %v1010_v18 = vld [vmem:[%s3004_s6 + $0x190] sm:$0xff]  ;;  %v1015_v24 = vld [vmem:[%s3004_s6 + $0x1b8] sm:$0xff] }
 0x2cb   : > { %v941_v20 = vmax.f32 %v893_v31, 0.0  ;;  %v2212_v31 = vcombine.low %v1003_v5, %v1007_v6 }
 0x2cc   : > { %v2848_v39 = vpack.c.bf16 %v943_v34, %v942_v25  ;;  %1573 = vmatpush1.bf16.msra.mxu1 %v2178_v28  ;;  %1686 = vmatpush1.bf16.msra.mxu0 %v2180_v29  ;;  %v2221_v34 = vcombine.high %v1011_v23, %v1015_v24 }
 0x2cd   : > { %v2850_v40 = vpack.c.bf16 %v941_v20, %v940_v30  ;;  %1574 = vmatprep.subr.bf16.mxu1 %v2187_v32  ;;  %1687 = vmatprep.subr.bf16.mxu0 %v2189_v33  ;;  %v2352_v43 = vpop.f32.mrb[16].mxu0  ;;  %v2210_v30 = vcombine.low %v1002_v2, %v1006_v4  ;;  %v2219_v33 = vcombine.high %v1010_v18, %v1014_v22 }
 0x2ce   : > { %v914_v44 = vadd.f32 %v2352_v43, %v2794_v58  ;;  %v905_v45 = vpop.f32.mrb[17].mxu0  ;;  %v2220_v43 = vcombine.low %v1011_v23, %v1015_v24 }
 0x2cf   : > { %1387 = vmatmul.mubr.bf16.gmra.mrb[28].mxu1 %v2812_v11  ;;  %1500 = vmatmul.mubr.bf16.gmra.mrb[28].mxu0 %v2812_v11  ;;  %v906_v49 = vadd.f32 %v2794_v58, %v905_v45  ;;  %v2353_v50 = vpop.f32.mrb[18].mxu0 }
 0x2d0   : > { %1396 = vmatprep.mubr.bf16.mxu1 %v2467_v52  ;;  %1509 = vmatprep.mubr.bf16.mxu0 %v2467_v52  ;;  %v946_v55 = vmax.f32 %v914_v44, 0.0  ;;  %v917_v56 = vadd.f32 %v2353_v50, %v2794_v58  ;;  %v908_v57 = vpop.f32.mrb[19].mxu0  ;;  %v2227_v44 = vcombine.high %v1018_v35, %v1022_v36 }
 0x2d1   : > { %1575 = vmatpush1.bf16.msra.mxu1 %v2186_v41  ;;  %1688 = vmatpush1.bf16.msra.mxu0 %v2188_v42  ;;  %v944_v59 = vmax.f32 %v906_v49, 0.0  ;;  %v909_v60 = vadd.f32 %v2794_v58, %v908_v57  ;;  %v2218_v42 = vcombine.low %v1010_v18, %v1014_v22 }
 0x2d2   : > { %v947_v63 = vmax.f32 %v917_v56, 0.0  ;;  %1576 = vmatprep.subr.bf16.mxu1 %v2195_v46  ;;  %1689 = vmatprep.subr.bf16.mxu0 %v2197_v47  ;;  %v2226_v46 = vcombine.low %v1018_v35, %v1022_v36 }
 0x2d3   : > { %v945_v3 = vmax.f32 %v909_v60, 0.0 }
 0x2d4   : > { %v2884_v7 = vpack.c.bf16 %v947_v63, %v946_v55 }
 0x2d5   : > { %v2886_v8 = vpack.c.bf16 %v945_v3, %v944_v59  ;;  %1577 = vmatpush1.bf16.msra.mxu1 %v2194_v61  ;;  %1690 = vmatpush1.bf16.msra.mxu0 %v2196_v62  ;;  %v2356_v13 = vpop.f32.mrb[20].mxu0 }
 0x2d6   : > { %1578 = vmatprep.subr.bf16.mxu1 %v2203_v0  ;;  %1691 = vmatprep.subr.bf16.mxu0 %v2205_v1  ;;  %v930_v14 = vadd.f32 %v2356_v13, %v2794_v58  ;;  %v921_v15 = vpop.f32.mrb[21].mxu0 }
 0x2d7   : > { %1397 = vmatmul.mubr.bf16.gmra.mrb[32].mxu1 %v2850_v40  ;;  %1510 = vmatmul.mubr.bf16.gmra.mrb[32].mxu0 %v2850_v40  ;;  %v922_v19 = vadd.f32 %v2794_v58, %v921_v15  ;;  %v2357_v21 = vpop.f32.mrb[22].mxu0 }
 0x2d8   : > { %1406 = vmatprep.mubr.bf16.mxu1 %v2467_v52  ;;  %1519 = vmatprep.mubr.bf16.mxu0 %v2467_v52  ;;  %v950_v25 = vmax.f32 %v930_v14, 0.0  ;;  %v933_v26 = vadd.f32 %v2357_v21, %v2794_v58  ;;  %v924_v27 = vpop.f32.mrb[23].mxu0 }
 0x2d9   : > { %1579 = vmatpush1.bf16.msra.mxu1 %v2202_v9  ;;  %1692 = vmatpush1.bf16.msra.mxu0 %v2204_v10  ;;  %v948_v28 = vmax.f32 %v922_v19, 0.0  ;;  %v925_v29 = vadd.f32 %v2794_v58, %v924_v27  ;;  %v1019_v58 = vld [vmem:[%s3004_s6 + $0x1d8] sm:$0xff] }
 0x2da   : > { %v951_v32 = vmax.f32 %v933_v26, 0.0  ;;  %1580 = vmatprep.subr.bf16.mxu1 %v2211_v16  ;;  %1693 = vmatprep.subr.bf16.mxu0 %v2213_v17  ;;  %v2229_v45 = vcombine.high %v1019_v58, %v1023_v37  ;;  %v2228_v47 = vcombine.low %v1019_v58, %v1023_v37 }
 0x2db   : > { %v949_v20 = vmax.f32 %v925_v29, 0.0 }
 0x2dc   : > { %v2920_v38 = vpack.c.bf16 %v951_v32, %v950_v25 }
 0x2dd   : > { %v958_v41 = vpack.c.bf16 %v949_v20, %v948_v28  ;;  %1581 = vmatpush1.bf16.msra.mxu1 %v2210_v30  ;;  %1694 = vmatpush1.bf16.msra.mxu0 %v2212_v31 }
 0x2de   : > { %1582 = vmatprep.subr.bf16.mxu1 %v2219_v33  ;;  %1695 = vmatprep.subr.bf16.mxu0 %v2221_v34 }
 0x2df   : > { %1407 = vmatmul.mubr.bf16.gmra.mrb[36].mxu1 %v2848_v39  ;;  %1520 = vmatmul.mubr.bf16.gmra.mrb[36].mxu0 %v2848_v39 }
 0x2e0   : > { %1416 = vmatprep.mubr.bf16.mxu1 %v2467_v52  ;;  %1529 = vmatprep.mubr.bf16.mxu0 %v2467_v52 }
 0x2e1   : > { %1583 = vmatpush1.bf16.msra.mxu1 %v2218_v42  ;;  %1696 = vmatpush1.bf16.msra.mxu0 %v2220_v43 }
 0x2e2   : > { %1584 = vmatprep.subr.bf16.mxu1 %v2227_v44  ;;  %1697 = vmatprep.subr.bf16.mxu0 %v2229_v45 }
 0x2e5   : > { %1585 = vmatpush1.bf16.msra.mxu1 %v2226_v46  ;;  %1698 = vmatpush1.bf16.msra.mxu0 %v2228_v47 }
 0x2e7   : > { %1417 = vmatmul.mubr.bf16.gmra.mrb[40].mxu1 %v2886_v8  ;;  %1530 = vmatmul.mubr.bf16.gmra.mrb[40].mxu0 %v2886_v8 }
 0x2e8   : > { %1426 = vmatprep.mubr.bf16.mxu1 %v2467_v52  ;;  %1539 = vmatprep.mubr.bf16.mxu0 %v2467_v52 }
 0x2ef   : > { %1427 = vmatmul.mubr.bf16.gmra.mrb[44].mxu1 %v2884_v7  ;;  %1540 = vmatmul.mubr.bf16.gmra.mrb[44].mxu0 %v2884_v7 }
 0x2f0   : > { %1436 = vmatprep.mubr.bf16.mxu1 %v2467_v52  ;;  %1549 = vmatprep.mubr.bf16.mxu0 %v2467_v52 }
 0x2f7   : > { %1437 = vmatmul.mubr.bf16.gmra.mrb[48].mxu1 %v958_v41  ;;  %1550 = vmatmul.mubr.bf16.gmra.mrb[48].mxu0 %v958_v41 }
 0x2f8   : > { %1446 = vmatprep.mubr.bf16.mxu1 %v2467_v52  ;;  %1559 = vmatprep.mubr.bf16.mxu0 %v2467_v52 }
 0x2ff   : > { %1447 = vmatmul.mubr.bf16.gmra.mrb[52].mxu1 %v2920_v38  ;;  %1560 = vmatmul.mubr.bf16.gmra.mrb[52].mxu0 %v2920_v38 }
 0x300   : > { %1602 = vmatprep.mubr.bf16.mxu1 %v2467_v52  ;;  %1715 = vmatprep.mubr.bf16.mxu0 %v2467_v52 }
 0x307   : > { %1603 = vmatmul.mubr.bf16.vlgmr.msra.gmra.mrb[56].mxu1 %v2814_v12  ;;  %1716 = vmatmul.mubr.bf16.vlgmr.msra.gmra.mrb[56].mxu0 %v2814_v12 }
 0x308   : > { %1612 = vmatprep.mubr.bf16.mxu1 %v2467_v52  ;;  %1725 = vmatprep.mubr.bf16.mxu0 %v2467_v52 }
 0x30f   : > { %1613 = vmatmul.mubr.bf16.gmra.mrb[60].mxu1 %v2812_v11  ;;  %1726 = vmatmul.mubr.bf16.gmra.mrb[60].mxu0 %v2812_v11 }
 0x310   : > { %1622 = vmatprep.mubr.bf16.mxu1 %v2467_v52  ;;  %1735 = vmatprep.mubr.bf16.mxu0 %v2467_v52 }
 0x317   : > { %1623 = vmatmul.mubr.bf16.gmra.mrb[64].mxu1 %v2850_v40  ;;  %1736 = vmatmul.mubr.bf16.gmra.mrb[64].mxu0 %v2850_v40 }
 0x318   : > { %1632 = vmatprep.mubr.bf16.mxu1 %v2467_v52  ;;  %1745 = vmatprep.mubr.bf16.mxu0 %v2467_v52 }
 0x31f   : > { %1633 = vmatmul.mubr.bf16.gmra.mrb[68].mxu1 %v2848_v39  ;;  %1746 = vmatmul.mubr.bf16.gmra.mrb[68].mxu0 %v2848_v39 }
 0x320   : > { %1642 = vmatprep.mubr.bf16.mxu1 %v2467_v52  ;;  %1755 = vmatprep.mubr.bf16.mxu0 %v2467_v52 }
 0x327   : > { %1643 = vmatmul.mubr.bf16.gmra.mrb[72].mxu1 %v2886_v8  ;;  %1756 = vmatmul.mubr.bf16.gmra.mrb[72].mxu0 %v2886_v8 }
 0x328   : > { %1652 = vmatprep.mubr.bf16.mxu1 %v2467_v52  ;;  %1765 = vmatprep.mubr.bf16.mxu0 %v2467_v52 }
 0x32f   : > { %1653 = vmatmul.mubr.bf16.gmra.mrb[76].mxu1 %v2884_v7  ;;  %1766 = vmatmul.mubr.bf16.gmra.mrb[76].mxu0 %v2884_v7 }
 0x330   : > { %1662 = vmatprep.mubr.bf16.mxu1 %v2467_v52  ;;  %1775 = vmatprep.mubr.bf16.mxu0 %v2467_v52 }
 0x337   : > { %1663 = vmatmul.mubr.bf16.gmra.mrb[80].mxu1 %v958_v41  ;;  %1776 = vmatmul.mubr.bf16.gmra.mrb[80].mxu0 %v958_v41 }
 0x338   : > { %1672 = vmatprep.mubr.bf16.mxu1 %v2467_v52  ;;  %1785 = vmatprep.mubr.bf16.mxu0 %v2467_v52 }
 0x33f   : > { %1673 = vmatmul.mubr.bf16.gmra.mrb[84].mxu1 %v2920_v38  ;;  %1786 = vmatmul.mubr.bf16.gmra.mrb[84].mxu0 %v2920_v38 }
 0x39a   : > { %v1378_v11 = vpop.f32.mrb[24].mxu1  ;;  %v1491_v12 = vpop.f32.mrb[24].mxu0 }
 0x39b   : > { %v1380_v39 = vpop.f32.mrb[25].mxu1  ;;  %v1493_v40 = vpop.f32.mrb[25].mxu0 }
 0x39c   : > { %v1382_v48 = vpop.f32.mrb[26].mxu1  ;;  %v1495_v49 = vpop.f32.mrb[26].mxu0 }
 0x39d   : > { %v1796_v50 = vmax.f32 %v1378_v11, %v1382_v48  ;;  %v1838_v51 = vmax.f32 %v1491_v12, %v1495_v49  ;;  %v1384_v53 = vpop.f32.mrb[27].mxu1  ;;  %v1497_v54 = vpop.f32.mrb[27].mxu0 }
 0x39e   : > { %v1817_v55 = vmax.f32 %v1380_v39, %v1384_v53  ;;  %v1859_v56 = vmax.f32 %v1493_v40, %v1497_v54 }
 0x3a2   : > { %v1388_v57 = vpop.f32.mrb[28].mxu1  ;;  %v1501_v59 = vpop.f32.mrb[28].mxu0 }
 0x3a3   : > { %v1797_v60 = vmax.f32 %v1796_v50, %v1388_v57  ;;  %v1839_v52 = vmax.f32 %v1838_v51, %v1501_v59  ;;  %v1390_v61 = vpop.f32.mrb[29].mxu1  ;;  %v1503_v62 = vpop.f32.mrb[29].mxu0 }
 0x3a4   : > { %v1818_v63 = vmax.f32 %v1817_v55, %v1390_v61  ;;  %v1860_v0 = vmax.f32 %v1859_v56, %v1503_v62  ;;  %v1392_v1 = vpop.f32.mrb[30].mxu1  ;;  %v1505_v2 = vpop.f32.mrb[30].mxu0 }
 0x3a5   : > { %v1798_v3 = vmax.f32 %v1797_v60, %v1392_v1  ;;  %v1840_v4 = vmax.f32 %v1839_v52, %v1505_v2  ;;  %v1394_v5 = vpop.f32.mrb[31].mxu1  ;;  %v1507_v6 = vpop.f32.mrb[31].mxu0 }
 0x3a6   : > { %v1819_v7 = vmax.f32 %v1818_v63, %v1394_v5  ;;  %v1861_v8 = vmax.f32 %v1860_v0, %v1507_v6 }
 0x3aa   : > { %v1398_v9 = vpop.f32.mrb[32].mxu1  ;;  %v1511_v10 = vpop.f32.mrb[32].mxu0 }
 0x3ab   : > { %v1799_v13 = vmax.f32 %v1798_v3, %v1398_v9  ;;  %v1841_v14 = vmax.f32 %v1840_v4, %v1511_v10  ;;  %v1400_v15 = vpop.f32.mrb[33].mxu1  ;;  %v1513_v16 = vpop.f32.mrb[33].mxu0 }
 0x3ac   : > { %v1820_v17 = vmax.f32 %v1819_v7, %v1400_v15  ;;  %v1862_v18 = vmax.f32 %v1861_v8, %v1513_v16  ;;  %v1402_v19 = vpop.f32.mrb[34].mxu1  ;;  %v1515_v21 = vpop.f32.mrb[34].mxu0 }
 0x3ad   : > { %v1800_v22 = vmax.f32 %v1799_v13, %v1402_v19  ;;  %v1842_v23 = vmax.f32 %v1841_v14, %v1515_v21  ;;  %v1404_v24 = vpop.f32.mrb[35].mxu1  ;;  %v1517_v25 = vpop.f32.mrb[35].mxu0 }
 0x3ae   : > { %v1821_v26 = vmax.f32 %v1820_v17, %v1404_v24  ;;  %v1863_v27 = vmax.f32 %v1862_v18, %v1517_v25 }
 0x3b2   : > { %v1408_v28 = vpop.f32.mrb[36].mxu1  ;;  %v1521_v29 = vpop.f32.mrb[36].mxu0 }
 0x3b3   : > { %v1801_v30 = vmax.f32 %v1800_v22, %v1408_v28  ;;  %v1843_v31 = vmax.f32 %v1842_v23, %v1521_v29  ;;  %v1410_v32 = vpop.f32.mrb[37].mxu1  ;;  %v1523_v33 = vpop.f32.mrb[37].mxu0 }
 0x3b4   : > { %v1822_v34 = vmax.f32 %v1821_v26, %v1410_v32  ;;  %v1864_v35 = vmax.f32 %v1863_v27, %v1523_v33  ;;  %v1412_v20 = vpop.f32.mrb[38].mxu1  ;;  %v1525_v36 = vpop.f32.mrb[38].mxu0 }
 0x3b5   : > { %v1802_v58 = vmax.f32 %v1801_v30, %v1412_v20  ;;  %v1844_v37 = vmax.f32 %v1843_v31, %v1525_v36  ;;  %v1414_v38 = vpop.f32.mrb[39].mxu1  ;;  %v1527_v41 = vpop.f32.mrb[39].mxu0 }
 0x3b6   : > { %v1823_v42 = vmax.f32 %v1822_v34, %v1414_v38  ;;  %v1865_v43 = vmax.f32 %v1864_v35, %v1527_v41 }
 0x3ba   : > { %v1418_v44 = vpop.f32.mrb[40].mxu1  ;;  %v1531_v45 = vpop.f32.mrb[40].mxu0 }
 0x3bb   : > { %v1803_v46 = vmax.f32 %v1802_v58, %v1418_v44  ;;  %v1845_v47 = vmax.f32 %v1844_v37, %v1531_v45  ;;  %v1420_v11 = vpop.f32.mrb[41].mxu1  ;;  %v1533_v12 = vpop.f32.mrb[41].mxu0 }
 0x3bc   : > { %v1824_v39 = vmax.f32 %v1823_v42, %v1420_v11  ;;  %v1866_v40 = vmax.f32 %v1865_v43, %v1533_v12  ;;  %v1422_v48 = vpop.f32.mrb[42].mxu1  ;;  %v1535_v49 = vpop.f32.mrb[42].mxu0  ;;  %v1985_v12 = vlaneseq }
 0x3bd   : > { %v1804_v50 = vmax.f32 %v1803_v46, %v1422_v48  ;;  %v1846_v51 = vmax.f32 %v1845_v47, %v1535_v49  ;;  %v1424_v53 = vpop.f32.mrb[43].mxu1  ;;  %v1537_v54 = vpop.f32.mrb[43].mxu0  ;;  %v2468_v47 = vmov 1966171168  }
 0x3be   : > { %v1825_v55 = vmax.f32 %v1824_v39, %v1424_v53  ;;  %v1867_v56 = vmax.f32 %v1866_v40, %v1537_v54  ;;  %v1983_v11 = vunpack.c.l.s4 %v2468_v47 }
 0x3c2   : > { %v1428_v57 = vpop.f32.mrb[44].mxu1  ;;  %v1541_v59 = vpop.f32.mrb[44].mxu0 }
 0x3c3   : > { %v1805_v60 = vmax.f32 %v1804_v50, %v1428_v57  ;;  %v1847_v52 = vmax.f32 %v1846_v51, %v1541_v59  ;;  %v1430_v61 = vpop.f32.mrb[45].mxu1  ;;  %v1543_v62 = vpop.f32.mrb[45].mxu0 }
 0x3c4   : > { %v1826_v63 = vmax.f32 %v1825_v55, %v1430_v61  ;;  %v1868_v0 = vmax.f32 %v1867_v56, %v1543_v62  ;;  %v1432_v1 = vpop.f32.mrb[46].mxu1  ;;  %v1545_v2 = vpop.f32.mrb[46].mxu0 }
 0x3c5   : > { %v1806_v3 = vmax.f32 %v1805_v60, %v1432_v1  ;;  %v1848_v4 = vmax.f32 %v1847_v52, %v1545_v2  ;;  %v1434_v5 = vpop.f32.mrb[47].mxu1  ;;  %v1547_v6 = vpop.f32.mrb[47].mxu0  ;;  %v1984_v60 = vunpack.c.0.s8 %v1983_v11  ;;  %v1986_v52 = vshrl.u32 %v1985_v12, 7 }
 0x3c6   : > { %v1827_v7 = vmax.f32 %v1826_v63, %v1434_v5  ;;  %v1869_v8 = vmax.f32 %v1868_v0, %v1547_v6 }
 0x3ca   : > { %v1438_v9 = vpop.f32.mrb[48].mxu1  ;;  %v1551_v10 = vpop.f32.mrb[48].mxu0 }
 0x3cb   : > { %v1807_v13 = vmax.f32 %v1806_v3, %v1438_v9  ;;  %v1849_v14 = vmax.f32 %v1848_v4, %v1551_v10  ;;  %v1440_v15 = vpop.f32.mrb[49].mxu1  ;;  %v1553_v16 = vpop.f32.mrb[49].mxu0 }
 0x3cc   : > { %v1828_v17 = vmax.f32 %v1827_v7, %v1440_v15  ;;  %v1870_v18 = vmax.f32 %v1869_v8, %v1553_v16  ;;  %v1442_v19 = vpop.f32.mrb[50].mxu1  ;;  %v1555_v21 = vpop.f32.mrb[50].mxu0 }
 0x3cd   : > { %v1808_v22 = vmax.f32 %v1807_v13, %v1442_v19  ;;  %v1850_v23 = vmax.f32 %v1849_v14, %v1555_v21  ;;  %v1444_v24 = vpop.f32.mrb[51].mxu1  ;;  %v1557_v25 = vpop.f32.mrb[51].mxu0  ;;  %v2968_v19 = vsub.s32 %v1984_v60, %v1986_v52 }
 0x3ce   : > { %v1829_v26 = vmax.f32 %v1828_v17, %v1444_v24  ;;  %v1871_v27 = vmax.f32 %v1870_v18, %v1557_v25 }
 0x3d2   : > { %v1448_v28 = vpop.f32.mrb[52].mxu1  ;;  %v1561_v29 = vpop.f32.mrb[52].mxu0 }
 0x3d3   : > { %v1809_v30 = vmax.f32 %v1808_v22, %v1448_v28  ;;  %v1851_v31 = vmax.f32 %v1850_v23, %v1561_v29  ;;  %v1450_v32 = vpop.f32.mrb[53].mxu1  ;;  %v1563_v33 = vpop.f32.mrb[53].mxu0 }
 0x3d4   : > { %v1830_v34 = vmax.f32 %v1829_v26, %v1450_v32  ;;  %v1872_v35 = vmax.f32 %v1871_v27, %v1563_v33  ;;  %v1452_v20 = vpop.f32.mrb[54].mxu1  ;;  %v1565_v36 = vpop.f32.mrb[54].mxu0 }
 0x3d5   : > { %v1810_v58 = vmax.f32 %v1809_v30, %v1452_v20  ;;  %v1852_v37 = vmax.f32 %v1851_v31, %v1565_v36  ;;  %v1454_v38 = vpop.f32.mrb[55].mxu1  ;;  %v1567_v41 = vpop.f32.mrb[55].mxu0 }
 0x3d6   : > { %v1831_v42 = vmax.f32 %v1830_v34, %v1454_v38  ;;  %v1873_v43 = vmax.f32 %v1872_v35, %v1567_v41 }
 0x3d7   : > { %v1811_v44 = vrot.slane %v1810_v58, 4  ;;  %v1853_v45 = vrot.slane %v1852_v37, 4 }
 0x3d8   : > { %v1832_v46 = vrot.slane %v1831_v42, 4  ;;  %v1874_v39 = vrot.slane %v1873_v43, 4 }
 0x3d9   : > { %v1812_v40 = vmax.f32 %v1810_v58, %v1811_v44  ;;  %v1854_v48 = vmax.f32 %v1852_v37, %v1853_v45 }
 0x3da   : > { %v1833_v49 = vmax.f32 %v1831_v42, %v1832_v46  ;;  %v1875_v50 = vmax.f32 %v1873_v43, %v1874_v39  ;;  %v1604_v51 = vpop.f32.mrb[56].mxu1  ;;  %v1717_v53 = vpop.f32.mrb[56].mxu0 }
 0x3db   : > { %v1813_v54 = vrot.slane %v1812_v40, 2  ;;  %v1855_v55 = vrot.slane %v1854_v48, 2  ;;  %v1606_v56 = vpop.f32.mrb[57].mxu1  ;;  %v1719_v57 = vpop.f32.mrb[57].mxu0 }
 0x3dc   : > { %v1834_v59 = vrot.slane %v1833_v49, 2  ;;  %v1876_v61 = vrot.slane %v1875_v50, 2  ;;  %v1608_v62 = vpop.f32.mrb[58].mxu1  ;;  %v1721_v63 = vpop.f32.mrb[58].mxu0 }
 0x3dd   : > { %v1814_v0 = vmax.f32 %v1812_v40, %v1813_v54  ;;  %v1856_v1 = vmax.f32 %v1854_v48, %v1855_v55  ;;  %v1880_v2 = vmax.f32 %v1604_v51, %v1608_v62  ;;  %v1922_v3 = vmax.f32 %v1717_v53, %v1721_v63  ;;  %v1610_v4 = vpop.f32.mrb[59].mxu1  ;;  %v1723_v5 = vpop.f32.mrb[59].mxu0 }
 0x3de   : > { %v1835_v6 = vmax.f32 %v1833_v49, %v1834_v59  ;;  %v1877_v7 = vmax.f32 %v1875_v50, %v1876_v61  ;;  %v1901_v8 = vmax.f32 %v1606_v56, %v1610_v4  ;;  %v1943_v9 = vmax.f32 %v1719_v57, %v1723_v5 }
 0x3df   : > { %v1815_v10 = vrot.slane %v1814_v0, 1  ;;  %v1857_v13 = vrot.slane %v1856_v1, 1 }
 0x3e0   : > { %v1836_v14 = vrot.slane %v1835_v6, 1  ;;  %v1878_v15 = vrot.slane %v1877_v7, 1 }
 0x3e1   : > { %v1816_v16 = vmax.f32 %v1814_v0, %v1815_v10  ;;  %v1858_v17 = vmax.f32 %v1856_v1, %v1857_v13 }
 0x3e2   : > { %v1837_v18 = vmax.f32 %v1835_v6, %v1836_v14  ;;  %v1879_v21 = vmax.f32 %v1877_v7, %v1878_v15  ;;  %v1614_v22 = vpop.f32.mrb[60].mxu1  ;;  %v1727_v23 = vpop.f32.mrb[60].mxu0 }
 0x3e3   : > { %v1881_v24 = vmax.f32 %v1880_v2, %v1614_v22  ;;  %v1923_v25 = vmax.f32 %v1922_v3, %v1727_v23  ;;  %v1616_v26 = vpop.f32.mrb[61].mxu1  ;;  %v1729_v27 = vpop.f32.mrb[61].mxu0 }
 0x3e4   : > { %v1978_v28 = vcombine.low %v1816_v16, %v1837_v18  ;;  %v1979_v29 = vcombine.low %v1858_v17, %v1879_v21  ;;  %v1902_v30 = vmax.f32 %v1901_v8, %v1616_v26  ;;  %v1944_v31 = vmax.f32 %v1943_v9, %v1729_v27  ;;  %v1618_v32 = vpop.f32.mrb[62].mxu1  ;;  %v1731_v33 = vpop.f32.mrb[62].mxu0 }
 0x3e5   : > { %v1882_v34 = vmax.f32 %v1881_v24, %v1618_v32  ;;  %v1924_v35 = vmax.f32 %v1923_v25, %v1731_v33  ;;  %v1620_v20 = vpop.f32.mrb[63].mxu1  ;;  %v1733_v36 = vpop.f32.mrb[63].mxu0 }
 0x3e6   : > { %v2971_v58 = vrot.slane %v1978_v28, %v2968_v19  ;;  %v2974_v37 = vrot.slane %v1979_v29, %v2968_v19  ;;  %v1903_v38 = vmax.f32 %v1902_v30, %v1620_v20  ;;  %v1945_v41 = vmax.f32 %v1944_v31, %v1733_v36 }
 0x3e8   : > { %v2010_v42 = vcombine.low %v2971_v58, %v2974_v37 }
 0x3ea   : > { %v1624_v43 = vpop.f32.mrb[64].mxu1  ;;  %v1737_v44 = vpop.f32.mrb[64].mxu0 }
 0x3eb   : > { %v1883_v45 = vmax.f32 %v1882_v34, %v1624_v43  ;;  %v1925_v46 = vmax.f32 %v1924_v35, %v1737_v44  ;;  %v1626_v47 = vpop.f32.mrb[65].mxu1  ;;  %v1739_v11 = vpop.f32.mrb[65].mxu0 }
 0x3ec   : > { %v1904_v12 = vmax.f32 %v1903_v38, %v1626_v47  ;;  %v1946_v39 = vmax.f32 %v1945_v41, %v1739_v11  ;;  %v1628_v40 = vpop.f32.mrb[66].mxu1  ;;  %v1741_v48 = vpop.f32.mrb[66].mxu0 }
 0x3ed   : > { %v1884_v49 = vmax.f32 %v1883_v45, %v1628_v40  ;;  %v1926_v50 = vmax.f32 %v1925_v46, %v1741_v48  ;;  %v1630_v51 = vpop.f32.mrb[67].mxu1  ;;  %v1743_v53 = vpop.f32.mrb[67].mxu0 }
 0x3ee   : > { %v1905_v54 = vmax.f32 %v1904_v12, %v1630_v51  ;;  %v1947_v55 = vmax.f32 %v1946_v39, %v1743_v53 }
 0x3f2   : > { %v1634_v56 = vpop.f32.mrb[68].mxu1  ;;  %v1747_v57 = vpop.f32.mrb[68].mxu0 }
 0x3f3   : > { %v1885_v59 = vmax.f32 %v1884_v49, %v1634_v56  ;;  %v1927_v60 = vmax.f32 %v1926_v50, %v1747_v57  ;;  %v1636_v52 = vpop.f32.mrb[69].mxu1  ;;  %v1749_v61 = vpop.f32.mrb[69].mxu0 }
 0x3f4   : > { %v1906_v62 = vmax.f32 %v1905_v54, %v1636_v52  ;;  %v1948_v63 = vmax.f32 %v1947_v55, %v1749_v61  ;;  %v1638_v0 = vpop.f32.mrb[70].mxu1  ;;  %v1751_v1 = vpop.f32.mrb[70].mxu0 }
 0x3f5   : > { %v1886_v2 = vmax.f32 %v1885_v59, %v1638_v0  ;;  %v1928_v3 = vmax.f32 %v1927_v60, %v1751_v1  ;;  %v1640_v4 = vpop.f32.mrb[71].mxu1  ;;  %v1753_v5 = vpop.f32.mrb[71].mxu0 }
 0x3f6   : > { %v1907_v6 = vmax.f32 %v1906_v62, %v1640_v4  ;;  %v1949_v7 = vmax.f32 %v1948_v63, %v1753_v5 }
 0x3fa   : > { %v1644_v8 = vpop.f32.mrb[72].mxu1  ;;  %v1757_v9 = vpop.f32.mrb[72].mxu0 }
 0x3fb   : > { %v1887_v10 = vmax.f32 %v1886_v2, %v1644_v8  ;;  %v1929_v13 = vmax.f32 %v1928_v3, %v1757_v9  ;;  %v1646_v14 = vpop.f32.mrb[73].mxu1  ;;  %v1759_v15 = vpop.f32.mrb[73].mxu0 }
 0x3fc   : > { %v1908_v16 = vmax.f32 %v1907_v6, %v1646_v14  ;;  %v1950_v17 = vmax.f32 %v1949_v7, %v1759_v15  ;;  %v1648_v18 = vpop.f32.mrb[74].mxu1  ;;  %v1761_v21 = vpop.f32.mrb[74].mxu0 }
 0x3fd   : > { %v1888_v22 = vmax.f32 %v1887_v10, %v1648_v18  ;;  %v1930_v23 = vmax.f32 %v1929_v13, %v1761_v21  ;;  %v1650_v24 = vpop.f32.mrb[75].mxu1  ;;  %v1763_v25 = vpop.f32.mrb[75].mxu0 }
 0x3fe   : > { %v1909_v26 = vmax.f32 %v1908_v16, %v1650_v24  ;;  %v1951_v27 = vmax.f32 %v1950_v17, %v1763_v25 }
 0x402   : > { %v1654_v28 = vpop.f32.mrb[76].mxu1  ;;  %v1767_v29 = vpop.f32.mrb[76].mxu0 }
 0x403   : > { %v1889_v30 = vmax.f32 %v1888_v22, %v1654_v28  ;;  %v1931_v31 = vmax.f32 %v1930_v23, %v1767_v29  ;;  %v1656_v32 = vpop.f32.mrb[77].mxu1  ;;  %v1769_v33 = vpop.f32.mrb[77].mxu0 }
 0x404   : > { %v1910_v34 = vmax.f32 %v1909_v26, %v1656_v32  ;;  %v1952_v35 = vmax.f32 %v1951_v27, %v1769_v33  ;;  %v1658_v20 = vpop.f32.mrb[78].mxu1  ;;  %v1771_v36 = vpop.f32.mrb[78].mxu0 }
 0x405   : > { %v1890_v38 = vmax.f32 %v1889_v30, %v1658_v20  ;;  %v1932_v41 = vmax.f32 %v1931_v31, %v1771_v36  ;;  %v1660_v43 = vpop.f32.mrb[79].mxu1  ;;  %v1773_v44 = vpop.f32.mrb[79].mxu0 }
 0x406   : > { %v1911_v45 = vmax.f32 %v1910_v34, %v1660_v43  ;;  %v1953_v46 = vmax.f32 %v1952_v35, %v1773_v44 }
 0x40a   : > { %v1664_v47 = vpop.f32.mrb[80].mxu1  ;;  %v1777_v11 = vpop.f32.mrb[80].mxu0 }
 0x40b   : > { %v1891_v12 = vmax.f32 %v1890_v38, %v1664_v47  ;;  %v1933_v39 = vmax.f32 %v1932_v41, %v1777_v11  ;;  %v1666_v40 = vpop.f32.mrb[81].mxu1  ;;  %v1779_v48 = vpop.f32.mrb[81].mxu0  ;;  %v2018_v11 = vrot.slane %v2010_v42, %v2968_v19 }
 0x40c   : > { %v1912_v49 = vmax.f32 %v1911_v45, %v1666_v40  ;;  %v1954_v50 = vmax.f32 %v1953_v46, %v1779_v48  ;;  %v1668_v51 = vpop.f32.mrb[82].mxu1  ;;  %v1781_v53 = vpop.f32.mrb[82].mxu0 }
 0x40d   : > { %v1892_v54 = vmax.f32 %v1891_v12, %v1668_v51  ;;  %v1934_v55 = vmax.f32 %v1933_v39, %v1781_v53  ;;  %v1670_v56 = vpop.f32.mrb[83].mxu1  ;;  %v1783_v57 = vpop.f32.mrb[83].mxu0 }
 0x40e   : > { %v1913_v59 = vmax.f32 %v1912_v49, %v1670_v56  ;;  %v1955_v60 = vmax.f32 %v1954_v50, %v1783_v57 }
 0x412   : > { %v1674_v52 = vpop.f32.mrb[84].mxu1  ;;  %v1787_v61 = vpop.f32.mrb[84].mxu0 }
 0x413   : > { %v1893_v62 = vmax.f32 %v1892_v54, %v1674_v52  ;;  %v1935_v63 = vmax.f32 %v1934_v55, %v1787_v61  ;;  %v1676_v0 = vpop.f32.mrb[85].mxu1  ;;  %v1789_v1 = vpop.f32.mrb[85].mxu0 }
 0x414   : > { %v1914_v2 = vmax.f32 %v1913_v59, %v1676_v0  ;;  %v1956_v3 = vmax.f32 %v1955_v60, %v1789_v1  ;;  %v1678_v4 = vpop.f32.mrb[86].mxu1  ;;  %v1791_v5 = vpop.f32.mrb[86].mxu0 }
 0x415   : > { %v1894_v6 = vmax.f32 %v1893_v62, %v1678_v4  ;;  %v1936_v7 = vmax.f32 %v1935_v63, %v1791_v5  ;;  %v1680_v8 = vpop.f32.mrb[87].mxu1  ;;  %v1793_v9 = vpop.f32.mrb[87].mxu0 }
 0x416   : > { %v1915_v10 = vmax.f32 %v1914_v2, %v1680_v8  ;;  %v1957_v13 = vmax.f32 %v1956_v3, %v1793_v9 }
 0x417   : > { %v1895_v14 = vrot.slane %v1894_v6, 4  ;;  %v1937_v15 = vrot.slane %v1936_v7, 4 }
 0x418   : > { %v1916_v16 = vrot.slane %v1915_v10, 4  ;;  %v1958_v17 = vrot.slane %v1957_v13, 4 }
 0x419   : > { %v1896_v18 = vmax.f32 %v1894_v6, %v1895_v14  ;;  %v1938_v21 = vmax.f32 %v1936_v7, %v1937_v15 }
 0x41a   : > { %v1917_v22 = vmax.f32 %v1915_v10, %v1916_v16  ;;  %v1959_v23 = vmax.f32 %v1957_v13, %v1958_v17 }
 0x41b   : > { %v1897_v24 = vrot.slane %v1896_v18, 2  ;;  %v1939_v25 = vrot.slane %v1938_v21, 2 }
 0x41c   : > { %v1918_v26 = vrot.slane %v1917_v22, 2  ;;  %v1960_v27 = vrot.slane %v1959_v23, 2 }
 0x41d   : > { %v1898_v28 = vmax.f32 %v1896_v18, %v1897_v24  ;;  %v1940_v29 = vmax.f32 %v1938_v21, %v1939_v25 }
 0x41e   : > { %v1919_v30 = vmax.f32 %v1917_v22, %v1918_v26  ;;  %v1961_v31 = vmax.f32 %v1959_v23, %v1960_v27 }
 0x41f   : > { %v1899_v32 = vrot.slane %v1898_v28, 1  ;;  %v1941_v33 = vrot.slane %v1940_v29, 1 }
 0x420   : > { %v1920_v34 = vrot.slane %v1919_v30, 1  ;;  %v1962_v35 = vrot.slane %v1961_v31, 1 }
 0x421   : > { %v1900_v20 = vmax.f32 %v1898_v28, %v1899_v32  ;;  %v1942_v36 = vmax.f32 %v1940_v29, %v1941_v33 }
 0x422   : > { %v1921_v38 = vmax.f32 %v1919_v30, %v1920_v34  ;;  %v1963_v41 = vmax.f32 %v1961_v31, %v1962_v35 }
 0x424   : > { %v1980_v43 = vcombine.low %v1900_v20, %v1921_v38  ;;  %v1981_v44 = vcombine.low %v1942_v36, %v1963_v41 }
 0x426   : > { %v2002_v45 = vrot.slane %v1980_v43, %v2968_v19  ;;  %v2009_v46 = vrot.slane %v1981_v44, %v2968_v19 }
 0x428   : > { %v2011_v47 = vcombine.low %v2002_v45, %v2009_v46 }
 0x42a   : > { %v2025_v12 = vrot.slane %v2011_v47, %v2968_v19 }
 0x42c   : > { %v2026_v39 = vcombine.low %v2018_v11, %v2025_v12 }
 0x42e   : > { %2029 = vst [vmem:[%s319_s20] sm:$0xff] %v2026_v39 }
 0x42f PF: > { %s18_s26 = sadd.s32 1, %s2462_s26   ;;  %s3014_s24 = smov %s2458_s25 }
 0x430   : > { %p15_p4 = scmp.ge.s32.totalorder %s18_s26, 4   ;;  %s3015_s25 = smov %s3017_s28 }
 0x432   :  { %17 = sbr.rel (!%p15_p4) target bundleno = 2 (0x2), region = 87 }
 0x439   :  { %2049 = vsyncpa [#allocation3], 1 }
 0x43a   :  { %2051 = vsyncpa [#allocation3 + $0x1], 1 }

// kernel: _lambda_.3
= control target key start
LH: loop header
LB: loop body
LE: loop exit
PB: predicated region body
PF: predicated region fallthrough
CT: control target
= control target key end

     0   :  { %s1960_s24 = smov 0   ;;  %s1962_s25 = smov 0   ;;  %s2243_s0 = inlined_call_operand.vmem [shape: f32[2,128,8], index: 0, kind: input, shape index: {}]   ;;  %s2244_s1 = inlined_call_operand.vmem [shape: f32[8,16], index: 1, kind: input, shape index: {}]   ;;  %s2245_s2 = inlined_call_operand.vmem [shape: f32[2,16,64], index: 2, kind: input, shape index: {}]   ;;  %s2246_s3 = inlined_call_operand.vmem [shape: f32[1,64], index: 3, kind: input, shape index: {}]   ;;  %s2247_s4 = inlined_call_operand.vmem [shape: bf16[64,128], index: 4, kind: input, shape index: {}]   ;;  %s2248_s5 = inlined_call_operand.vmem [shape: f32[1,128], index: 5, kind: input, shape index: {}]   ;;  %s2249_s6 = inlined_call_operand.vmem [shape: bf16[128,512], index: 6, kind: input, shape index: {}]   ;;  %s2250_s7 = inlined_call_operand.vmem [shape: f32[2,1,512], index: 7, kind: output, shape index: {}]  }
   0x1   :  { %s1964_s26 = smov 0  }
   0x2 LB: > { %s29_s27 = sadd.s32 1, %s1911_s25  ;;  %p1595_p0 = scmp.ge.s32.totalorder %s1915_s26, 1  ;;  %s1915_s26 = sphi %s1964_s26, %s17_s26   ;;  %s1911_s25 = sphi %s1962_s25, %s2254_s25   ;;  %s1907_s24 = sphi %s1960_s24, %s2253_s24  }
   0x3   : > { %p31_p1 = scmp.ge.s32.totalorder %s29_s27, 2  ;;  %p266_p2 = scmp.lt.s32.totalorder %s1915_s26, 3 }
   0x5   : > { %s2256_s27 = smov (%p31_p1, %s29_s27), 0  ;;  %p267_p3 = pnand %p1595_p0, %p266_p2 }
   0x6   : > { %v342_v0 = vld [vmem:[%s2244_s1] sm:$0xff] (!%p267_p3)  ;;  %p307_p4 = scmp.lt.s32.totalorder (!%p267_p3), %s1907_s24, 1  ;;  %vm343_vm0 = vcmask (!%p267_p3), 64512   ;;  %v1842_v21 = vld [vmem:[%s2247_s4 + $0x8] sm:$0xff] (!%p267_p3)   ;;  %vm562_vm1 = vcmask (!%p267_p3), 130048   ;;  %v1843_v54 = vld [vmem:[%s2247_s4 + $0x10] sm:$0xff] (!%p267_p3)  }
   0x7   : > { %270 = sbr.rel (%p267_p3) target bundleno = 975 (0x3cf), region = 48  ;;  %1730 = vmatprep.subr.mxu0 (!%p267_p3), %v342_v0  ;;  %1812 = vmatprep.subr.mxu1 (!%p267_p3), %v342_v0  ;;  %v1841_v20 = vld [vmem:[%s2247_s4] sm:$0xff] (!%p267_p3)   ;;  %v1844_v55 = vld [vmem:[%s2247_s4 + $0x18] sm:$0xff] (!%p267_p3)   ;;  %vm819_vm2 = vcmask (!%p267_p3), 523264  }
   0x8   : > { %1731 = vmatpush3.msra.mxu0 (!%p267_p3), %v342_v0  ;;  %1813 = vmatpush3.msra.mxu1 (!%p267_p3), %v342_v0  ;;  %v1845_v56 = vld [vmem:[%s2249_s6] ss:$16 sps:$4 sm:$0xff] (!%p267_p3)   ;;  %v1847_v57 = vld [vmem:[%s2249_s6 + $0x4] ss:$16 sps:$4 sm:$0xff] (!%p267_p3)   ;;  %v1850_v58 = vld [vmem:[%s2249_s6 + $0xc] ss:$16 sps:$4 sm:$0xff] (!%p267_p3)  }
   0x9   : > { %1784 = vmatprep.subr.bf16.mxu0 (!%p267_p3), %v1841_v20  ;;  %v1853_v59 = vld [vmem:[%s2249_s6 + $0x24] ss:$16 sps:$4 sm:$0xff] (!%p267_p3)   ;;  %v1851_v60 = vld [vmem:[%s2249_s6 + $0x20] ss:$16 sps:$4 sm:$0xff] (!%p267_p3)  }
   0xa   : > { %v1859_v61 = vld [vmem:[%s2249_s6 + $0x44] ss:$16 sps:$4 sm:$0xff] (!%p267_p3)   ;;  %v1857_v62 = vld [vmem:[%s2249_s6 + $0x40] ss:$16 sps:$4 sm:$0xff] (!%p267_p3)  }
   0xb   : > { %v1865_v63 = vld [vmem:[%s2249_s6 + $0x64] ss:$16 sps:$4 sm:$0xff] (!%p267_p3)   ;;  %v1863_v0 = vld [vmem:[%s2249_s6 + $0x60] ss:$16 sps:$4 sm:$0xff] (!%p267_p3)  }
   0xe   : > { %s2258_s24 = smov (!%p307_p4, %s1907_s24), 1 }
   0xf   : > { %s1681_s30 = sshll.u32 %s2258_s24, 7  ;;  %s1682_s11 = sshll.u32 %s2258_s24, 4 }
  0x10   : > { %s1987_s10 = scalar_lea.vmem %s2243_s0, %s1681_s30  ;;  %s320_s14 = scalar_lea.vmem %s2245_s2, %s1682_s11 }
  0x11   : > { %v326_v1 = vld [vmem:[%s1987_s10] sm:$0xff]  ;;  %v327_v2 = vld [vmem:[%s1987_s10 + $0x8] sm:$0xff]  ;;  %v328_v3 = vld [vmem:[%s1987_s10 + $0x10] sm:$0xff]  ;;  %s1600_s15 = sshll.u32 %s2258_s24, 2 }
  0x12   : > { %1732 = vmatprep.mubr.msk.f32.mxu0 %vm343_vm0, %v326_v1  ;;  %v334_v4 = vld [vmem:[%s1987_s10 + $0x40] sm:$0xff]  ;;  %v329_v5 = vld [vmem:[%s1987_s10 + $0x18] sm:$0xff]  ;;  %v335_v6 = vld [vmem:[%s1987_s10 + $0x48] sm:$0xff]  ;;  %s2224_s18 = scalar_lea.vmem %s2250_s7, %s1600_s15 }
  0x13   : > { %1733 = vmatmul.mubr.msk.f32.vlgmr.msra.gmra.mrb[0].mxu0 %vm343_vm0, %v327_v2  ;;  %1744 = vmatprep.mubr.msk.f32.mxu1 %vm343_vm0, %v334_v4  ;;  %v336_v7 = vld [vmem:[%s1987_s10 + $0x50] sm:$0xff]  ;;  %v330_v8 = vld [vmem:[%s1987_s10 + $0x20] sm:$0xff]  ;;  %v337_v9 = vld [vmem:[%s1987_s10 + $0x58] sm:$0xff] }
  0x14   : > { %1735 = vmatprep.mubr.msk.f32.mxu0 %vm343_vm0, %v328_v3  ;;  %1745 = vmatmul.mubr.msk.f32.vlgmr.msra.gmra.mrb[0].mxu1 %vm343_vm0, %v335_v6  ;;  %v331_v10 = vld [vmem:[%s1987_s10 + $0x28] sm:$0xff]  ;;  %v338_v11 = vld [vmem:[%s1987_s10 + $0x60] sm:$0xff]  ;;  %v332_v14 = vld [vmem:[%s1987_s10 + $0x30] sm:$0xff] }
  0x15   : > { %1747 = vmatprep.mubr.msk.f32.mxu1 %vm343_vm0, %v336_v7  ;;  %v553_v12 = vld [vmem:[%s320_s14] sm:$0xff]  ;;  %v554_v13 = vld [vmem:[%s320_s14 + $0x8] sm:$0xff]  ;;  %v340_v17 = vld [vmem:[%s1987_s10 + $0x70] sm:$0xff]  ;;  %1785 = vmatpush3.bf16.msra.mxu0 %v1841_v20 }
  0x16   : > { %v1808_v15 = vpack.c.bf16 %v554_v13, %v553_v12  ;;  %v339_v16 = vld [vmem:[%s1987_s10 + $0x68] sm:$0xff]  ;;  %v333_v18 = vld [vmem:[%s1987_s10 + $0x38] sm:$0xff]  ;;  %1786 = vmatprep.subr.bf16.mxu0 %v1842_v21  ;;  %v1871_v1 = vld [vmem:[%s2249_s6 + $0x84] ss:$16 sps:$4 sm:$0xff]  }
  0x17   : > { %1736 = vmatmul.mubr.msk.f32.gmra.mrb[2].mxu0 %vm343_vm0, %v329_v5  ;;  %v341_v19 = vld [vmem:[%s1987_s10 + $0x78] sm:$0xff]  ;;  %v1869_v2 = vld [vmem:[%s2249_s6 + $0x80] ss:$16 sps:$4 sm:$0xff]   ;;  %v1877_v3 = vld [vmem:[%s2249_s6 + $0xa4] ss:$16 sps:$4 sm:$0xff]  }
  0x18   : > { %1738 = vmatprep.mubr.msk.f32.mxu0 %vm343_vm0, %v330_v8  ;;  %1748 = vmatmul.mubr.msk.f32.gmra.mrb[2].mxu1 %vm343_vm0, %v337_v9  ;;  %v1875_v4 = vld [vmem:[%s2249_s6 + $0xa0] ss:$16 sps:$4 sm:$0xff]  }
  0x19   : > { %1809 = vmatprep.subr.bf16.mxu1 %v1808_v15  ;;  %1750 = vmatprep.mubr.msk.f32.mxu1 %vm343_vm0, %v338_v11  ;;  %v2095_v5 = vld [vmem:[%s2246_s3] ss:$0 sm:$0xff] }
  0x1a   : > { %1811 = vmatpush3.bf16.msra.mxu1 %v1808_v15  ;;  %1787 = vmatpush3.bf16.msra.mxu0 %v1842_v21 }
  0x1b   : > { %1739 = vmatmul.mubr.msk.f32.gmra.mrb[4].mxu0 %vm343_vm0, %v331_v10  ;;  %1788 = vmatprep.subr.bf16.mxu0 %v1843_v54 }
  0x1c   : > { %1741 = vmatprep.mubr.msk.f32.mxu0 %vm343_vm0, %v332_v14  ;;  %1751 = vmatmul.mubr.msk.f32.gmra.mrb[4].mxu1 %vm343_vm0, %v339_v16 }
  0x1d   : > { %1753 = vmatprep.mubr.msk.f32.mxu1 %vm343_vm0, %v340_v17  ;;  %1157 = vmatprep.subr.bf16.mxu1 %v1847_v57 }
  0x1e   : > { %1789 = vmatpush3.bf16.msra.mxu0 %v1843_v54 }
  0x1f   : > { %1742 = vmatmul.mubr.msk.f32.gmra.mrb[6].mxu0 %vm343_vm0, %v333_v18  ;;  %1790 = vmatprep.subr.bf16.mxu0 %v1844_v55 }
  0x20   : > { %1754 = vmatmul.mubr.msk.f32.gmra.mrb[6].mxu1 %vm343_vm0, %v341_v19 }
  0x22   : > { %1791 = vmatpush3.bf16.msra.mxu0 %v1844_v55 }
  0x23   : > { %1270 = vmatprep.subr.bf16.mxu0 %v1850_v58  ;;  %v1872_v58 = vld [vmem:[%s2249_s6 + $0x88] ss:$16 sps:$4 sm:$0xff]  }
  0xe6   : > { %v1734_v22 = vpop.f32.mrb[0].mxu0 }
  0xe7   : > { %v458_v23 = vpop.f32.mrb[1].mxu0  ;;  %v1746_v25 = vpop.f32.mrb[0].mxu1  ;;  %v538_v26 = vmax.f32 %v1734_v22, 0.0  ;;  %v1848_v22 = vld [vmem:[%s2249_s6 + $0x8] ss:$16 sps:$4 sm:$0xff]  }
  0xe8   : > { %v537_v24 = vmax.f32 %v458_v23, 0.0  ;;  %v498_v27 = vpop.f32.mrb[1].mxu1  ;;  %v546_v47 = vmax.f32 %v1746_v25, 0.0  ;;  %v1856_v25 = vld [vmem:[%s2249_s6 + $0x2c] ss:$16 sps:$4 sm:$0xff]  }
  0xe9   : > { %v545_v44 = vmax.f32 %v498_v27, 0.0 }
  0xea   : > { %v1737_v28 = vpop.f32.mrb[2].mxu0  ;;  %1760 = vmatprep.mubr.msk.f32.mxu1 %vm562_vm1, %v537_v24 }
  0xeb   : > { %v468_v29 = vpop.f32.mrb[3].mxu0  ;;  %1761 = vmatmul.mubr.msk.f32.vlgmr.msra.gmra.mrb[8].mxu1 %vm562_vm1, %v538_v26  ;;  %v1749_v31 = vpop.f32.mrb[2].mxu1  ;;  %v540_v32 = vmax.f32 %v1737_v28, 0.0 }
  0xec   : > { %v539_v30 = vmax.f32 %v468_v29, 0.0  ;;  %v508_v33 = vpop.f32.mrb[3].mxu1  ;;  %v548_v49 = vmax.f32 %v1749_v31, 0.0  ;;  %1158 = vmatpush1.bf16.msra.mxu1 %v1845_v56  ;;  %v1854_v31 = vld [vmem:[%s2249_s6 + $0x28] ss:$16 sps:$4 sm:$0xff]  }
  0xed   : > { %v547_v48 = vmax.f32 %v508_v33, 0.0  ;;  %1159 = vmatprep.subr.bf16.mxu1 %v1853_v59 }
  0xee   : > { %1763 = vmatprep.mubr.msk.f32.mxu1 %vm562_vm1, %v539_v30  ;;  %v1740_v34 = vpop.f32.mrb[4].mxu0 }
  0xef   : > { %1764 = vmatmul.mubr.msk.f32.gmra.mrb[10].mxu1 %vm562_vm1, %v540_v32  ;;  %v542_v35 = vmax.f32 %v1740_v34, 0.0  ;;  %v478_v36 = vpop.f32.mrb[5].mxu0  ;;  %v1752_v38 = vpop.f32.mrb[4].mxu1  ;;  %v1862_v34 = vld [vmem:[%s2249_s6 + $0x4c] ss:$16 sps:$4 sm:$0xff]  }
  0xf0   : > { %v541_v37 = vmax.f32 %v478_v36, 0.0  ;;  %v518_v39 = vpop.f32.mrb[5].mxu1  ;;  %v550_v51 = vmax.f32 %v1752_v38, 0.0  ;;  %1160 = vmatpush1.bf16.msra.mxu1 %v1851_v60 }
  0xf1   : > { %v549_v50 = vmax.f32 %v518_v39, 0.0  ;;  %1161 = vmatprep.subr.bf16.mxu1 %v1859_v61  ;;  %v1880_v61 = vld [vmem:[%s2249_s6 + $0xac] ss:$16 sps:$4 sm:$0xff]  }
  0xf2   : > { %v1743_v40 = vpop.f32.mrb[6].mxu0  ;;  %1766 = vmatprep.mubr.msk.f32.mxu1 %vm562_vm1, %v541_v37 }
  0xf3   : > { %v544_v41 = vmax.f32 %v1743_v40, 0.0  ;;  %v488_v42 = vpop.f32.mrb[7].mxu0  ;;  %1767 = vmatmul.mubr.msk.f32.gmra.mrb[12].mxu1 %vm562_vm1, %v542_v35  ;;  %v1755_v45 = vpop.f32.mrb[6].mxu1  ;;  %v1860_v40 = vld [vmem:[%s2249_s6 + $0x48] ss:$16 sps:$4 sm:$0xff]  }
  0xf4   : > { %v543_v43 = vmax.f32 %v488_v42, 0.0  ;;  %v528_v46 = vpop.f32.mrb[7].mxu1  ;;  %v552_v53 = vmax.f32 %v1755_v45, 0.0  ;;  %1162 = vmatpush1.bf16.msra.mxu1 %v1857_v62 }
  0xf5   : > { %v551_v52 = vmax.f32 %v528_v46, 0.0  ;;  %1163 = vmatprep.subr.bf16.mxu1 %v1865_v63 }
  0xf6   : > { %1769 = vmatprep.mubr.msk.f32.mxu1 %vm562_vm1, %v543_v43  ;;  %v1868_v43 = vld [vmem:[%s2249_s6 + $0x6c] ss:$16 sps:$4 sm:$0xff]  }
  0xf7   : > { %1770 = vmatmul.mubr.msk.f32.gmra.mrb[14].mxu1 %vm562_vm1, %v544_v41 }
  0xf8   : > { %1772 = vmatprep.mubr.msk.f32.mxu1 %vm562_vm1, %v545_v44  ;;  %1164 = vmatpush1.bf16.msra.mxu1 %v1863_v0 }
  0xf9   : > { %1165 = vmatprep.subr.bf16.mxu1 %v1871_v1 }
  0xfb   : > { %1773 = vmatmul.mubr.msk.f32.gmra.mrb[16].mxu1 %vm562_vm1, %v546_v47 }
  0xfc   : > { %1775 = vmatprep.mubr.msk.f32.mxu1 %vm562_vm1, %v547_v48  ;;  %1166 = vmatpush1.bf16.msra.mxu1 %v1869_v2 }
  0xfd   : > { %1167 = vmatprep.subr.bf16.mxu1 %v1877_v3  ;;  %v1878_v3 = vld [vmem:[%s2249_s6 + $0xa8] ss:$16 sps:$4 sm:$0xff]  }
  0xff   : > { %1776 = vmatmul.mubr.msk.f32.gmra.mrb[18].mxu1 %vm562_vm1, %v548_v49  ;;  %v1866_v49 = vld [vmem:[%s2249_s6 + $0x68] ss:$16 sps:$4 sm:$0xff]  }
 0x100   : > { %1778 = vmatprep.mubr.msk.f32.mxu1 %vm562_vm1, %v549_v50  ;;  %1168 = vmatpush1.bf16.msra.mxu1 %v1875_v4 }
 0x103   : > { %1779 = vmatmul.mubr.msk.f32.gmra.mrb[20].mxu1 %vm562_vm1, %v550_v51 }
 0x104   : > { %1781 = vmatprep.mubr.msk.f32.mxu1 %vm562_vm1, %v551_v52  ;;  %v1874_v52 = vld [vmem:[%s2249_s6 + $0x8c] ss:$16 sps:$4 sm:$0xff]  }
 0x107   : > { %1782 = vmatmul.mubr.msk.f32.gmra.mrb[22].mxu1 %vm562_vm1, %v552_v53 }
 0x1be   : > { %v1762_v6 = vpop.f32.mrb[8].mxu1 }
 0x1bf   : > { %v683_v7 = vadd.f32 %v1762_v6, %v2095_v5  ;;  %v677_v8 = vpop.f32.mrb[9].mxu1 }
 0x1c0   : > { %v678_v9 = vadd.f32 %v2095_v5, %v677_v8 }
 0x1c1   : > { %v757_v10 = vmax.f32 %v683_v7, 0.0 }
 0x1c2   : > { %v756_v11 = vmax.f32 %v678_v9, 0.0  ;;  %v1765_v12 = vpop.f32.mrb[10].mxu1 }
 0x1c3   : > { %v693_v13 = vadd.f32 %v1765_v12, %v2095_v5  ;;  %v687_v14 = vpop.f32.mrb[11].mxu1  ;;  %v1884_v12 = vld [vmem:[%s2249_s6 + $0xc8] ss:$16 sps:$4 sm:$0xff]  }
 0x1c4   : > { %v772_v15 = vpack.c.bf16 %v757_v10, %v756_v11  ;;  %v688_v16 = vadd.f32 %v2095_v5, %v687_v14  ;;  %v1883_v10 = vld [vmem:[%s2249_s6 + $0xc4] ss:$16 sps:$4 sm:$0xff]   ;;  %v1886_v11 = vld [vmem:[%s2249_s6 + $0xcc] ss:$16 sps:$4 sm:$0xff]  }
 0x1c5   : > { %v759_v17 = vmax.f32 %v693_v13, 0.0  ;;  %1169 = vmatprep.subr.bf16.mxu1 %v1883_v10  ;;  %v1889_v13 = vld [vmem:[%s2249_s6 + $0xe4] ss:$16 sps:$4 sm:$0xff]   ;;  %v1892_v14 = vld [vmem:[%s2249_s6 + $0xec] ss:$16 sps:$4 sm:$0xff]  }
 0x1c6   : > { %v758_v18 = vmax.f32 %v688_v16, 0.0  ;;  %1792 = vmatprep.mubr.msk.bf16.mxu0 %vm819_vm2, %v772_v15  ;;  %v1768_v19 = vpop.f32.mrb[12].mxu1  ;;  %v1887_v15 = vld [vmem:[%s2249_s6 + $0xe0] ss:$16 sps:$4 sm:$0xff]   ;;  %v1890_v16 = vld [vmem:[%s2249_s6 + $0xe8] ss:$16 sps:$4 sm:$0xff]  }
 0x1c7   : > { %v703_v20 = vadd.f32 %v1768_v19, %v2095_v5  ;;  %v697_v21 = vpop.f32.mrb[13].mxu1 }
 0x1c8   : > { %v773_v23 = vpack.c.bf16 %v759_v17, %v758_v18  ;;  %v698_v24 = vadd.f32 %v2095_v5, %v697_v21  ;;  %v1917_v17 = vmov 0   ;;  %v2183_v18 = vld [vmem:[%s2248_s5] ss:$0 sm:$0xff] }
 0x1c9   : > { %v761_v26 = vmax.f32 %v703_v20, 0.0  ;;  %1189 = vmatprep.mubr.bf16.mxu1 %v1917_v17 }
 0x1ca   : > { %1793 = vmatmul.mubr.msk.bf16.vlgmr.msra.gmra.mrb[8].mxu0 %vm819_vm2, %v773_v23  ;;  %v760_v27 = vmax.f32 %v698_v24, 0.0  ;;  %v1771_v28 = vpop.f32.mrb[14].mxu1 }
 0x1cb   : > { %v713_v29 = vadd.f32 %v1771_v28, %v2095_v5  ;;  %v707_v30 = vpop.f32.mrb[15].mxu1  ;;  %1271 = vmatpush1.bf16.msra.mxu0 %v1848_v22 }
 0x1cc   : > { %v774_v32 = vpack.c.bf16 %v761_v26, %v760_v27  ;;  %v708_v33 = vadd.f32 %v2095_v5, %v707_v30  ;;  %1272 = vmatprep.subr.bf16.mxu0 %v1856_v25 }
 0x1cd   : > { %v763_v35 = vmax.f32 %v713_v29, 0.0 }
 0x1ce   : > { %v762_v36 = vmax.f32 %v708_v33, 0.0  ;;  %1796 = vmatprep.mubr.msk.bf16.mxu0 %vm819_vm2, %v774_v32  ;;  %v1774_v37 = vpop.f32.mrb[16].mxu1 }
 0x1cf   : > { %v723_v38 = vadd.f32 %v1774_v37, %v2095_v5  ;;  %v717_v39 = vpop.f32.mrb[17].mxu1  ;;  %1273 = vmatpush1.bf16.msra.mxu0 %v1854_v31 }
 0x1d0   : > { %v775_v41 = vpack.c.bf16 %v763_v35, %v762_v36  ;;  %v718_v42 = vadd.f32 %v2095_v5, %v717_v39  ;;  %1274 = vmatprep.subr.bf16.mxu0 %v1862_v34 }
 0x1d1   : > { %v765_v44 = vmax.f32 %v723_v38, 0.0 }
 0x1d2   : > { %1797 = vmatmul.mubr.msk.bf16.gmra.mrb[12].mxu0 %vm819_vm2, %v775_v41  ;;  %v764_v45 = vmax.f32 %v718_v42, 0.0  ;;  %v1777_v46 = vpop.f32.mrb[18].mxu1 }
 0x1d3   : > { %v733_v47 = vadd.f32 %v1777_v46, %v2095_v5  ;;  %v727_v48 = vpop.f32.mrb[19].mxu1  ;;  %1275 = vmatpush1.bf16.msra.mxu0 %v1860_v40 }
 0x1d4   : > { %v776_v50 = vpack.c.bf16 %v765_v44, %v764_v45  ;;  %v728_v51 = vadd.f32 %v2095_v5, %v727_v48  ;;  %1276 = vmatprep.subr.bf16.mxu0 %v1868_v43 }
 0x1d5   : > { %v767_v53 = vmax.f32 %v733_v47, 0.0 }
 0x1d6   : > { %v766_v54 = vmax.f32 %v728_v51, 0.0  ;;  %1800 = vmatprep.mubr.msk.bf16.mxu0 %vm819_vm2, %v776_v50  ;;  %v1780_v55 = vpop.f32.mrb[20].mxu1 }
 0x1d7   : > { %v743_v56 = vadd.f32 %v1780_v55, %v2095_v5  ;;  %v737_v57 = vpop.f32.mrb[21].mxu1  ;;  %1277 = vmatpush1.bf16.msra.mxu0 %v1866_v49 }
 0x1d8   : > { %v777_v59 = vpack.c.bf16 %v767_v53, %v766_v54  ;;  %v738_v60 = vadd.f32 %v2095_v5, %v737_v57  ;;  %1278 = vmatprep.subr.bf16.mxu0 %v1874_v52 }
 0x1d9   : > { %v769_v62 = vmax.f32 %v743_v56, 0.0 }
 0x1da   : > { %1801 = vmatmul.mubr.msk.bf16.gmra.mrb[16].mxu0 %vm819_vm2, %v777_v59  ;;  %v768_v63 = vmax.f32 %v738_v60, 0.0  ;;  %v1783_v0 = vpop.f32.mrb[22].mxu1 }
 0x1db   : > { %v753_v1 = vadd.f32 %v1783_v0, %v2095_v5  ;;  %v747_v2 = vpop.f32.mrb[23].mxu1  ;;  %1279 = vmatpush1.bf16.msra.mxu0 %v1872_v58 }
 0x1dc   : > { %v778_v4 = vpack.c.bf16 %v769_v62, %v768_v63  ;;  %v748_v6 = vadd.f32 %v2095_v5, %v747_v2  ;;  %1280 = vmatprep.subr.bf16.mxu0 %v1880_v61  ;;  %v1881_v5 = vld [vmem:[%s2249_s6 + $0xc0] ss:$16 sps:$4 sm:$0xff]  }
 0x1dd   : > { %v771_v7 = vmax.f32 %v753_v1, 0.0  ;;  %1170 = vmatpush1.bf16.msra.mxu1 %v1881_v5  ;;  %v1471_v5 = vlaneseq }
 0x1de   : > { %v770_v8 = vmax.f32 %v748_v6, 0.0  ;;  %1804 = vmatprep.mubr.msk.bf16.mxu0 %vm819_vm2, %v778_v4  ;;  %1171 = vmatprep.subr.bf16.mxu1 %v1889_v13  ;;  %v1918_v13 = vmov -inf  }
 0x1df   : > { %1281 = vmatpush1.bf16.msra.mxu0 %v1878_v3  ;;  %vm2216_vm3 = vcmp.lt.s32.totalorder %v1471_v5, 512 }
 0x1e0   : > { %v779_v9 = vpack.c.bf16 %v771_v7, %v770_v8  ;;  %1282 = vmatprep.subr.bf16.mxu0 %v1886_v11  ;;  %1475 = vst.msk [vmem:[%s2224_s18] sm:$0xf] %vm2216_vm3, %v1918_v13 }
 0x1e1   : > { %1172 = vmatpush1.bf16.msra.mxu1 %v1887_v15 }
 0x1e2   : > { %1805 = vmatmul.mubr.msk.bf16.gmra.mrb[20].mxu0 %vm819_vm2, %v779_v9 }
 0x1e3   : > { %1283 = vmatpush1.bf16.msra.mxu0 %v1884_v12  ;;  %1302 = vmatprep.mubr.bf16.mxu0 %v1917_v17 }
 0x1e4   : > { %1284 = vmatprep.subr.bf16.mxu0 %v1892_v14 }
 0x1e7   : > { %1285 = vmatpush1.bf16.msra.mxu0 %v1890_v16 }
 0x29d   : > { %v1794_v19 = vpop.f32.mrb[8].mxu0 }
 0x29e   : > { %v887_v20 = vadd.f32 %v1794_v19, %v2183_v18  ;;  %v878_v21 = vpop.f32.mrb[9].mxu0 }
 0x29f   : > { %v879_v22 = vadd.f32 %v2183_v18, %v878_v21  ;;  %v1795_v23 = vpop.f32.mrb[10].mxu0 }
 0x2a0   : > { %v890_v24 = vadd.f32 %v1795_v23, %v2183_v18  ;;  %v881_v25 = vpop.f32.mrb[11].mxu0  ;;  %v943_v27 = vmax.f32 %v887_v20, 0.0 }
 0x2a1   : > { %v882_v26 = vadd.f32 %v2183_v18, %v881_v25  ;;  %v941_v29 = vmax.f32 %v879_v22, 0.0 }
 0x2a2   : > { %v944_v28 = vmax.f32 %v890_v24, 0.0 }
 0x2a3   : > { %v942_v30 = vmax.f32 %v882_v26, 0.0 }
 0x2a4   : > { %v958_v31 = vpack.c.bf16 %v944_v28, %v943_v27 }
 0x2a5   : > { %v957_v32 = vpack.c.bf16 %v942_v30, %v941_v29  ;;  %v1798_v33 = vpop.f32.mrb[12].mxu0 }
 0x2a6   : > { %v903_v34 = vadd.f32 %v1798_v33, %v2183_v18  ;;  %v894_v35 = vpop.f32.mrb[13].mxu0 }
 0x2a7   : > { %1190 = vmatmul.mubr.bf16.vlgmr.msra.gmra.mrb[24].mxu1 %v957_v32  ;;  %1303 = vmatmul.mubr.bf16.vlgmr.msra.gmra.mrb[24].mxu0 %v957_v32  ;;  %v895_v36 = vadd.f32 %v2183_v18, %v894_v35  ;;  %v1799_v37 = vpop.f32.mrb[14].mxu0 }
 0x2a8   : > { %v947_v38 = vmax.f32 %v903_v34, 0.0  ;;  %v906_v39 = vadd.f32 %v1799_v37, %v2183_v18  ;;  %v897_v40 = vpop.f32.mrb[15].mxu0  ;;  %1199 = vmatprep.mubr.bf16.mxu1 %v1917_v17  ;;  %1312 = vmatprep.mubr.bf16.mxu0 %v1917_v17 }
 0x2a9   : > { %v945_v41 = vmax.f32 %v895_v36, 0.0  ;;  %v898_v42 = vadd.f32 %v2183_v18, %v897_v40 }
 0x2aa   : > { %v948_v43 = vmax.f32 %v906_v39, 0.0 }
 0x2ab   : > { %v946_v44 = vmax.f32 %v898_v42, 0.0 }
 0x2ac   : > { %v960_v45 = vpack.c.bf16 %v948_v43, %v947_v38 }
 0x2ad   : > { %v959_v46 = vpack.c.bf16 %v946_v44, %v945_v41  ;;  %v1802_v47 = vpop.f32.mrb[16].mxu0 }
 0x2ae   : > { %v919_v48 = vadd.f32 %v1802_v47, %v2183_v18  ;;  %v910_v49 = vpop.f32.mrb[17].mxu0 }
 0x2af   : > { %1200 = vmatmul.mubr.bf16.gmra.mrb[28].mxu1 %v958_v31  ;;  %1313 = vmatmul.mubr.bf16.gmra.mrb[28].mxu0 %v958_v31  ;;  %v911_v50 = vadd.f32 %v2183_v18, %v910_v49  ;;  %v1803_v51 = vpop.f32.mrb[18].mxu0 }
 0x2b0   : > { %1209 = vmatprep.mubr.bf16.mxu1 %v1917_v17  ;;  %1322 = vmatprep.mubr.bf16.mxu0 %v1917_v17  ;;  %v951_v52 = vmax.f32 %v919_v48, 0.0  ;;  %v922_v53 = vadd.f32 %v1803_v51, %v2183_v18  ;;  %v913_v54 = vpop.f32.mrb[19].mxu0 }
 0x2b1   : > { %v949_v55 = vmax.f32 %v911_v50, 0.0  ;;  %v914_v56 = vadd.f32 %v2183_v18, %v913_v54 }
 0x2b2   : > { %v952_v57 = vmax.f32 %v922_v53, 0.0 }
 0x2b3   : > { %v950_v58 = vmax.f32 %v914_v56, 0.0 }
 0x2b4   : > { %v962_v59 = vpack.c.bf16 %v952_v57, %v951_v52 }
 0x2b5   : > { %v961_v60 = vpack.c.bf16 %v950_v58, %v949_v55  ;;  %v1806_v61 = vpop.f32.mrb[20].mxu0 }
 0x2b6   : > { %v935_v62 = vadd.f32 %v1806_v61, %v2183_v18  ;;  %v926_v63 = vpop.f32.mrb[21].mxu0 }
 0x2b7   : > { %1210 = vmatmul.mubr.bf16.gmra.mrb[32].mxu1 %v959_v46  ;;  %1323 = vmatmul.mubr.bf16.gmra.mrb[32].mxu0 %v959_v46  ;;  %v927_v0 = vadd.f32 %v2183_v18, %v926_v63  ;;  %v1807_v1 = vpop.f32.mrb[22].mxu0 }
 0x2b8   : > { %1219 = vmatprep.mubr.bf16.mxu1 %v1917_v17  ;;  %1332 = vmatprep.mubr.bf16.mxu0 %v1917_v17  ;;  %v955_v2 = vmax.f32 %v935_v62, 0.0  ;;  %v938_v3 = vadd.f32 %v1807_v1, %v2183_v18  ;;  %v929_v4 = vpop.f32.mrb[23].mxu0 }
 0x2b9   : > { %v953_v6 = vmax.f32 %v927_v0, 0.0  ;;  %v930_v7 = vadd.f32 %v2183_v18, %v929_v4 }
 0x2ba   : > { %v956_v8 = vmax.f32 %v938_v3, 0.0 }
 0x2bb   : > { %v954_v9 = vmax.f32 %v930_v7, 0.0 }
 0x2bc   : > { %v964_v10 = vpack.c.bf16 %v956_v8, %v955_v2 }
 0x2bd   : > { %v963_v11 = vpack.c.bf16 %v954_v9, %v953_v6 }
 0x2bf   : > { %1220 = vmatmul.mubr.bf16.gmra.mrb[36].mxu1 %v960_v45  ;;  %1333 = vmatmul.mubr.bf16.gmra.mrb[36].mxu0 %v960_v45 }
 0x2c0   : > { %1229 = vmatprep.mubr.bf16.mxu1 %v1917_v17  ;;  %1342 = vmatprep.mubr.bf16.mxu0 %v1917_v17 }
 0x2c7   : > { %1230 = vmatmul.mubr.bf16.gmra.mrb[40].mxu1 %v961_v60  ;;  %1343 = vmatmul.mubr.bf16.gmra.mrb[40].mxu0 %v961_v60 }
 0x2c8   : > { %1239 = vmatprep.mubr.bf16.mxu1 %v1917_v17  ;;  %1352 = vmatprep.mubr.bf16.mxu0 %v1917_v17 }
 0x2cf   : > { %1240 = vmatmul.mubr.bf16.gmra.mrb[44].mxu1 %v962_v59  ;;  %1353 = vmatmul.mubr.bf16.gmra.mrb[44].mxu0 %v962_v59 }
 0x2d0   : > { %1249 = vmatprep.mubr.bf16.mxu1 %v1917_v17  ;;  %1362 = vmatprep.mubr.bf16.mxu0 %v1917_v17 }
 0x2d7   : > { %1250 = vmatmul.mubr.bf16.gmra.mrb[48].mxu1 %v963_v11  ;;  %1363 = vmatmul.mubr.bf16.gmra.mrb[48].mxu0 %v963_v11 }
 0x2d8   : > { %1259 = vmatprep.mubr.bf16.mxu1 %v1917_v17  ;;  %1372 = vmatprep.mubr.bf16.mxu0 %v1917_v17 }
 0x2df   : > { %1260 = vmatmul.mubr.bf16.gmra.mrb[52].mxu1 %v964_v10  ;;  %1373 = vmatmul.mubr.bf16.gmra.mrb[52].mxu0 %v964_v10 }
 0x37a   : > { %v1191_v14 = vpop.f32.mrb[24].mxu1  ;;  %v1304_v15 = vpop.f32.mrb[24].mxu0 }
 0x37b   : > { %v1193_v16 = vpop.f32.mrb[25].mxu1  ;;  %v1306_v17 = vpop.f32.mrb[25].mxu0 }
 0x37c   : > { %v1195_v18 = vpop.f32.mrb[26].mxu1  ;;  %v1308_v19 = vpop.f32.mrb[26].mxu0 }
 0x37d   : > { %v1383_v20 = vmax.f32 %v1191_v14, %v1195_v18  ;;  %v1425_v21 = vmax.f32 %v1304_v15, %v1308_v19  ;;  %v1197_v22 = vpop.f32.mrb[27].mxu1  ;;  %v1310_v23 = vpop.f32.mrb[27].mxu0 }
 0x37e   : > { %v1404_v24 = vmax.f32 %v1193_v16, %v1197_v22  ;;  %v1446_v25 = vmax.f32 %v1306_v17, %v1310_v23 }
 0x382   : > { %v1201_v26 = vpop.f32.mrb[28].mxu1  ;;  %v1314_v27 = vpop.f32.mrb[28].mxu0 }
 0x383   : > { %v1384_v28 = vmax.f32 %v1383_v20, %v1201_v26  ;;  %v1426_v29 = vmax.f32 %v1425_v21, %v1314_v27  ;;  %v1203_v30 = vpop.f32.mrb[29].mxu1  ;;  %v1316_v31 = vpop.f32.mrb[29].mxu0 }
 0x384   : > { %v1405_v32 = vmax.f32 %v1404_v24, %v1203_v30  ;;  %v1447_v33 = vmax.f32 %v1446_v25, %v1316_v31  ;;  %v1205_v34 = vpop.f32.mrb[30].mxu1  ;;  %v1318_v35 = vpop.f32.mrb[30].mxu0 }
 0x385   : > { %v1385_v36 = vmax.f32 %v1384_v28, %v1205_v34  ;;  %v1427_v37 = vmax.f32 %v1426_v29, %v1318_v35  ;;  %v1207_v38 = vpop.f32.mrb[31].mxu1  ;;  %v1320_v39 = vpop.f32.mrb[31].mxu0 }
 0x386   : > { %v1406_v40 = vmax.f32 %v1405_v32, %v1207_v38  ;;  %v1448_v41 = vmax.f32 %v1447_v33, %v1320_v39 }
 0x38a   : > { %v1211_v42 = vpop.f32.mrb[32].mxu1  ;;  %v1324_v43 = vpop.f32.mrb[32].mxu0 }
 0x38b   : > { %v1386_v44 = vmax.f32 %v1385_v36, %v1211_v42  ;;  %v1428_v45 = vmax.f32 %v1427_v37, %v1324_v43  ;;  %v1213_v46 = vpop.f32.mrb[33].mxu1  ;;  %v1326_v47 = vpop.f32.mrb[33].mxu0 }
 0x38c   : > { %v1407_v48 = vmax.f32 %v1406_v40, %v1213_v46  ;;  %v1449_v49 = vmax.f32 %v1448_v41, %v1326_v47  ;;  %v1215_v50 = vpop.f32.mrb[34].mxu1  ;;  %v1328_v51 = vpop.f32.mrb[34].mxu0 }
 0x38d   : > { %v1387_v52 = vmax.f32 %v1386_v44, %v1215_v50  ;;  %v1429_v53 = vmax.f32 %v1428_v45, %v1328_v51  ;;  %v1217_v54 = vpop.f32.mrb[35].mxu1  ;;  %v1330_v55 = vpop.f32.mrb[35].mxu0 }
 0x38e   : > { %v1408_v56 = vmax.f32 %v1407_v48, %v1217_v54  ;;  %v1450_v57 = vmax.f32 %v1449_v49, %v1330_v55 }
 0x392   : > { %v1221_v58 = vpop.f32.mrb[36].mxu1  ;;  %v1334_v59 = vpop.f32.mrb[36].mxu0 }
 0x393   : > { %v1388_v60 = vmax.f32 %v1387_v52, %v1221_v58  ;;  %v1430_v61 = vmax.f32 %v1429_v53, %v1334_v59  ;;  %v1223_v62 = vpop.f32.mrb[37].mxu1  ;;  %v1336_v63 = vpop.f32.mrb[37].mxu0 }
 0x394   : > { %v1409_v0 = vmax.f32 %v1408_v56, %v1223_v62  ;;  %v1451_v1 = vmax.f32 %v1450_v57, %v1336_v63  ;;  %v1225_v2 = vpop.f32.mrb[38].mxu1  ;;  %v1338_v3 = vpop.f32.mrb[38].mxu0 }
 0x395   : > { %v1389_v4 = vmax.f32 %v1388_v60, %v1225_v2  ;;  %v1431_v6 = vmax.f32 %v1430_v61, %v1338_v3  ;;  %v1227_v7 = vpop.f32.mrb[39].mxu1  ;;  %v1340_v8 = vpop.f32.mrb[39].mxu0 }
 0x396   : > { %v1410_v9 = vmax.f32 %v1409_v0, %v1227_v7  ;;  %v1452_v10 = vmax.f32 %v1451_v1, %v1340_v8 }
 0x39a   : > { %v1231_v11 = vpop.f32.mrb[40].mxu1  ;;  %v1344_v13 = vpop.f32.mrb[40].mxu0 }
 0x39b   : > { %v1390_v14 = vmax.f32 %v1389_v4, %v1231_v11  ;;  %v1432_v15 = vmax.f32 %v1431_v6, %v1344_v13  ;;  %v1233_v16 = vpop.f32.mrb[41].mxu1  ;;  %v1346_v17 = vpop.f32.mrb[41].mxu0 }
 0x39c   : > { %v1411_v18 = vmax.f32 %v1410_v9, %v1233_v16  ;;  %v1453_v19 = vmax.f32 %v1452_v10, %v1346_v17  ;;  %v1235_v20 = vpop.f32.mrb[42].mxu1  ;;  %v1348_v21 = vpop.f32.mrb[42].mxu0 }
 0x39d   : > { %v1391_v22 = vmax.f32 %v1390_v14, %v1235_v20  ;;  %v1433_v23 = vmax.f32 %v1432_v15, %v1348_v21  ;;  %v1237_v24 = vpop.f32.mrb[43].mxu1  ;;  %v1350_v25 = vpop.f32.mrb[43].mxu0  ;;  %v1919_v21 = vmov 1966171168  }
 0x39e   : > { %v1412_v26 = vmax.f32 %v1411_v18, %v1237_v24  ;;  %v1454_v27 = vmax.f32 %v1453_v19, %v1350_v25 }
 0x3a2   : > { %v1241_v28 = vpop.f32.mrb[44].mxu1  ;;  %v1354_v29 = vpop.f32.mrb[44].mxu0 }
 0x3a3   : > { %v1392_v30 = vmax.f32 %v1391_v22, %v1241_v28  ;;  %v1434_v31 = vmax.f32 %v1433_v23, %v1354_v29  ;;  %v1243_v32 = vpop.f32.mrb[45].mxu1  ;;  %v1356_v33 = vpop.f32.mrb[45].mxu0  ;;  %v1484_v22 = vunpack.c.l.s4 %v1919_v21 }
 0x3a4   : > { %v1413_v34 = vmax.f32 %v1412_v26, %v1243_v32  ;;  %v1455_v35 = vmax.f32 %v1454_v27, %v1356_v33  ;;  %v1245_v36 = vpop.f32.mrb[46].mxu1  ;;  %v1358_v37 = vpop.f32.mrb[46].mxu0  ;;  %v1487_v32 = vshrl.u32 %v1471_v5, 7 }
 0x3a5   : > { %v1393_v38 = vmax.f32 %v1392_v30, %v1245_v36  ;;  %v1435_v39 = vmax.f32 %v1434_v31, %v1358_v37  ;;  %v1247_v40 = vpop.f32.mrb[47].mxu1  ;;  %v1360_v41 = vpop.f32.mrb[47].mxu0  ;;  %v1485_v31 = vunpack.c.0.s8 %v1484_v22 }
 0x3a6   : > { %v1414_v42 = vmax.f32 %v1413_v34, %v1247_v40  ;;  %v1456_v43 = vmax.f32 %v1455_v35, %v1360_v41 }
 0x3a7   : > { %v1488_v41 = vsub.s32 %v1485_v31, %v1487_v32 }
 0x3aa   : > { %v1251_v44 = vpop.f32.mrb[48].mxu1  ;;  %v1364_v45 = vpop.f32.mrb[48].mxu0 }
 0x3ab   : > { %v1394_v46 = vmax.f32 %v1393_v38, %v1251_v44  ;;  %v1436_v47 = vmax.f32 %v1435_v39, %v1364_v45  ;;  %v1253_v48 = vpop.f32.mrb[49].mxu1  ;;  %v1366_v49 = vpop.f32.mrb[49].mxu0 }
 0x3ac   : > { %v1415_v50 = vmax.f32 %v1414_v42, %v1253_v48  ;;  %v1457_v51 = vmax.f32 %v1456_v43, %v1366_v49  ;;  %v1255_v52 = vpop.f32.mrb[50].mxu1  ;;  %v1368_v53 = vpop.f32.mrb[50].mxu0  ;;  %v1476_v48 = vld [vmem:[%s2224_s18] sm:$0xf] }
 0x3ad   : > { %v1395_v54 = vmax.f32 %v1394_v46, %v1255_v52  ;;  %v1437_v55 = vmax.f32 %v1436_v47, %v1368_v53  ;;  %v1257_v56 = vpop.f32.mrb[51].mxu1  ;;  %v1370_v57 = vpop.f32.mrb[51].mxu0 }
 0x3ae   : > { %v1416_v58 = vmax.f32 %v1415_v50, %v1257_v56  ;;  %v1458_v59 = vmax.f32 %v1457_v51, %v1370_v57 }
 0x3b2   : > { %v1261_v60 = vpop.f32.mrb[52].mxu1  ;;  %v1374_v61 = vpop.f32.mrb[52].mxu0 }
 0x3b3   : > { %v1396_v62 = vmax.f32 %v1395_v54, %v1261_v60  ;;  %v1438_v63 = vmax.f32 %v1437_v55, %v1374_v61  ;;  %v1263_v0 = vpop.f32.mrb[53].mxu1  ;;  %v1376_v1 = vpop.f32.mrb[53].mxu0 }
 0x3b4   : > { %v1417_v2 = vmax.f32 %v1416_v58, %v1263_v0  ;;  %v1459_v3 = vmax.f32 %v1458_v59, %v1376_v1  ;;  %v1265_v4 = vpop.f32.mrb[54].mxu1  ;;  %v1378_v6 = vpop.f32.mrb[54].mxu0 }
 0x3b5   : > { %v1397_v7 = vmax.f32 %v1396_v62, %v1265_v4  ;;  %v1439_v8 = vmax.f32 %v1438_v63, %v1378_v6  ;;  %v1267_v9 = vpop.f32.mrb[55].mxu1  ;;  %v1380_v10 = vpop.f32.mrb[55].mxu0 }
 0x3b6   : > { %v1418_v11 = vmax.f32 %v1417_v2, %v1267_v9  ;;  %v1460_v13 = vmax.f32 %v1459_v3, %v1380_v10 }
 0x3b7   : > { %v1398_v14 = vrot.slane %v1397_v7, 4  ;;  %v1440_v15 = vrot.slane %v1439_v8, 4 }
 0x3b8   : > { %v1419_v16 = vrot.slane %v1418_v11, 4  ;;  %v1461_v17 = vrot.slane %v1460_v13, 4 }
 0x3b9   : > { %v1399_v18 = vmax.f32 %v1397_v7, %v1398_v14  ;;  %v1441_v19 = vmax.f32 %v1439_v8, %v1440_v15 }
 0x3ba   : > { %v1420_v20 = vmax.f32 %v1418_v11, %v1419_v16  ;;  %v1462_v23 = vmax.f32 %v1460_v13, %v1461_v17 }
 0x3bb   : > { %v1400_v24 = vrot.slane %v1399_v18, 2  ;;  %v1442_v25 = vrot.slane %v1441_v19, 2 }
 0x3bc   : > { %v1421_v26 = vrot.slane %v1420_v20, 2  ;;  %v1463_v27 = vrot.slane %v1462_v23, 2 }
 0x3bd   : > { %v1401_v28 = vmax.f32 %v1399_v18, %v1400_v24  ;;  %v1443_v29 = vmax.f32 %v1441_v19, %v1442_v25 }
 0x3be   : > { %v1422_v30 = vmax.f32 %v1420_v20, %v1421_v26  ;;  %v1464_v33 = vmax.f32 %v1462_v23, %v1463_v27 }
 0x3bf   : > { %v1402_v34 = vrot.slane %v1401_v28, 1  ;;  %v1444_v35 = vrot.slane %v1443_v29, 1 }
 0x3c0   : > { %v1423_v36 = vrot.slane %v1422_v30, 1  ;;  %v1465_v37 = vrot.slane %v1464_v33, 1 }
 0x3c1   : > { %v1403_v38 = vmax.f32 %v1401_v28, %v1402_v34  ;;  %v1445_v39 = vmax.f32 %v1443_v29, %v1444_v35 }
 0x3c2   : > { %v1424_v40 = vmax.f32 %v1422_v30, %v1423_v36  ;;  %v1466_v42 = vmax.f32 %v1464_v33, %v1465_v37 }
 0x3c4   : > { %v1481_v43 = vcombine.low %v1403_v38, %v1424_v40  ;;  %v1482_v44 = vcombine.low %v1445_v39, %v1466_v42 }
 0x3c6   : > { %v1489_v45 = vrot.slane %v1481_v43, %v1488_v41  ;;  %v1496_v46 = vrot.slane %v1482_v44, %v1488_v41 }
 0x3c8   : > { %v1497_v47 = vcombine.low %v1489_v45, %v1496_v46 }
 0x3ca   : > { %v1504_v49 = vrot.slane %v1497_v47, %v1488_v41 }
 0x3cc   : > { %v1506_v5 = vmax.f32 %v1476_v48, %v1504_v49 }
 0x3ce   : > { %1511 = vst.msk [vmem:[%s2224_s18] sm:$0xf] %vm2216_vm3, %v1506_v5 }
 0x3cf PF: > { %s17_s26 = sadd.s32 1, %s1915_s26   ;;  %s2253_s24 = smov %s1911_s25 }
 0x3d0   : > { %p14_p5 = scmp.ge.s32.totalorder %s17_s26, 4   ;;  %s2254_s25 = smov %s2256_s27 }
 0x3d2   :  { %16 = sbr.rel (!%p14_p5) target bundleno = 2 (0x2), region = 85 }

</bundles_post_ra>
